<compile_context>
chip_gen: v5e
topology: v5e:2x2
jax: 0.10.0
libtpu: 0.0.40
codegen_flags: <defaults>
</compile_context>

<pallas_src>
import math

import jax
import jax.numpy as jnp
from jax.experimental import pallas as pl
from jax.experimental.pallas import tpu as pltpu

# ----------------------------- config (small synthetic sizes) ---------------
BATCH       = 2
SEQ_LEN     = 8      # seg_len
INPUT_DIM   = 64     # input_dim
HIDDEN_DIM  = 32     # hidden_dim
NUM_HEADS   = 2
NUM_LAYERS  = 2      # tr_layer_number
FF_DIM      = 4 * HIDDEN_DIM   # TODO(synk): dim_feedforward of unshown layer assumed 4*hidden
OUT_FEATS   = 32     # out_features
NUM_CLASSES = 7
POS_ENC     = True
EPS         = 1e-5

BS        = BATCH * SEQ_LEN       # flattened rows (batch folded into sublanes)
HEAD_DIM  = HIDDEN_DIM // NUM_HEADS
NH_BS     = NUM_HEADS * BS        # head-stacked rows for the fused attention
OUT_ROWS  = 8                     # sublane-padded output rows
OUT_LANES = 128                   # lane-dense output width


# ----------------------------- packed-slab layout ----------------------------
def _build_layout():
    """Static (name -> (row_offset, rows, cols)) layout of the single packed slab."""
    entries = [
        ("wp",    INPUT_DIM, HIDDEN_DIM),
        ("projv", 3,         HIDDEN_DIM),       # bp, gp, bep
        ("pe",    BS,        HIDDEN_DIM),       # PE pre-tiled across batch
        ("mask",  NH_BS,     NH_BS),            # additive attention mask (0 / -1e30)
        ("pool",  OUT_ROWS,  BS),               # temporal mean-pooling matrix
    ]
    for l in range(NUM_LAYERS):
        entries += [
            (f"wqkv{l}", HIDDEN_DIM, 3 * HIDDEN_DIM),
            (f"bqkv{l}", 1,          3 * HIDDEN_DIM),
            (f"wo{l}",   HIDDEN_DIM, HIDDEN_DIM),
            (f"lvec{l}", 6,          HIDDEN_DIM),   # bo, g1, be1, b2, g2, be2
            (f"w1{l}",   HIDDEN_DIM, FF_DIM),
            (f"b1{l}",   1,          FF_DIM),
            (f"w2{l}",   FF_DIM,     HIDDEN_DIM),
        ]
    entries += [
        ("wc1",  HIDDEN_DIM, OUT_FEATS),
        ("cvec", 3,          OUT_FEATS),        # bc1, gc, bec
        ("wc2",  OUT_FEATS,  OUT_LANES),         # zero-padded beyond NUM_CLASSES
        ("bc2",  1,          OUT_LANES),
    ]
    layout, off = {}, 0
    for name, rows, cols in entries:
        layout[name] = (off, rows, cols)
        off += ((rows + 7) // 8) * 8             # 8-sublane aligned sections
    return layout, off


LAYOUT, SLAB_ROWS = _build_layout()


# ----------------------------- in-kernel helpers -----------------------------
def _layernorm(x, gamma, beta):
    mu = jnp.mean(x, axis=-1, keepdims=True)
    var = jnp.mean((x - mu) ** 2, axis=-1, keepdims=True)
    return (x - mu) * jax.lax.rsqrt(var + EPS) * gamma + beta


def _gelu(x):
    # exact GELU (PyTorch nn.GELU default, erf-based)
    return 0.5 * x * (1.0 + jax.lax.erf(x * (1.0 / math.sqrt(2.0))))


def _dot(a, b):
    return jnp.dot(a, b, preferred_element_type=jnp.float32)


def _get(slab_ref, name):
    off, rows, cols = LAYOUT[name]
    return slab_ref[off:off + rows, 0:cols]      # static slice -> free


# ----------------------------- the fused kernel ------------------------------
def videoformer_kernel(x_ref, slab_ref, out_ref):
    x = x_ref[...]                                       # (B*S, D_in)

    # ---- image_proj: Linear -> LayerNorm (Dropout = identity at inference) --
    projv = _get(slab_ref, "projv")
    h = _dot(x, _get(slab_ref, "wp")) + projv[0:1]
    h = _layernorm(h, projv[1:2], projv[2:3])

    pe = _get(slab_ref, "pe")                            # (B*S, H) pre-tiled
    mask_add = _get(slab_ref, "mask")                    # (NH*BS, NH*BS), 0 / -1e30

    # ---- transformer stack (Python-unrolled, L is small & static) ----------
    for l in range(NUM_LAYERS):
        lv = _get(slab_ref, f"lvec{l}")                  # (6, H)
        xin = h + pe if POS_ENC else h

        # fused QKV (scale already folded into Q weights/bias at pack time)
        qkv = _dot(xin, _get(slab_ref, f"wqkv{l}")) + _get(slab_ref, f"bqkv{l}")
        q = qkv[:, 0:HIDDEN_DIM]
        k = qkv[:, HIDDEN_DIM:2 * HIDDEN_DIM]
        v = qkv[:, 2 * HIDDEN_DIM:3 * HIDDEN_DIM]

        # stack heads along sublanes -> one score matmul, one softmax, one PV
        q_st = jnp.concatenate(
            [q[:, hh * HEAD_DIM:(hh + 1) * HEAD_DIM] for hh in range(NUM_HEADS)], axis=0)
        k_st = jnp.concatenate(
            [k[:, hh * HEAD_DIM:(hh + 1) * HEAD_DIM] for hh in range(NUM_HEADS)], axis=0)
        v_st = jnp.concatenate(
            [v[:, hh * HEAD_DIM:(hh + 1) * HEAD_DIM] for hh in range(NUM_HEADS)], axis=0)

        s = jax.lax.dot_general(q_st, k_st, (((1,), (1,)), ((), ())),
                                preferred_element_type=jnp.float32) + mask_add
        m = jnp.max(s, axis=-1, keepdims=True)
        e = jnp.exp(s - m)                               # masked entries underflow to 0
        p = e * (1.0 / jnp.sum(e, axis=-1, keepdims=True))
        o_st = _dot(p, v_st)                             # (NH*BS, head_dim)

        head_cat = jnp.concatenate(
            [o_st[hh * BS:(hh + 1) * BS, :] for hh in range(NUM_HEADS)], axis=-1)
        attn = _dot(head_cat, _get(slab_ref, f"wo{l}")) + lv[0:1]

        y = _layernorm(xin + attn, lv[1:2], lv[2:3])

        # TODO(synk): activation of unshown TransformerEncoderLayer assumed ReLU
        ff = jnp.maximum(_dot(y, _get(slab_ref, f"w1{l}")) + _get(slab_ref, f"b1{l}"), 0.0)
        ff = _dot(ff, _get(slab_ref, f"w2{l}")) + lv[3:4]
        layer_out = _layernorm(y + ff, lv[4:5], lv[5:6])

        # outer residual from VideoFormer.forward
        h = h + layer_out

    # ---- temporal mean pooling via the precomputed (8, B*S) pool matrix ----
    pooled = _dot(_get(slab_ref, "pool"), h)             # (8, H); rows >= B are zero

    # ---- classifier: Linear -> LayerNorm -> GELU -> Linear (lane-dense out) -
    cv = _get(slab_ref, "cvec")
    c = _dot(pooled, _get(slab_ref, "wc1")) + cv[0:1]
    c = _layernorm(c, cv[1:2], cv[2:3])
    c = _gelu(c)
    out_ref[...] = _dot(c, _get(slab_ref, "wc2")) + _get(slab_ref, "bc2")   # (8, 128)


# ----------------------------- wrapper ---------------------------------------
@jax.jit
def videoformer_forward(x, slab):
    B, S, D = x.shape
    x2 = x.reshape(B * S, D)                             # fold batch into sublanes
    out = pl.pallas_call(
        videoformer_kernel,
        out_shape=jax.ShapeDtypeStruct((OUT_ROWS, OUT_LANES), jnp.float32),
    )(x2, slab)
    return out[:B, :NUM_CLASSES]                         # (B, num_classes)


# ----------------------------- parameter init --------------------------------
def _xavier(key, shape):
    fan_in, fan_out = shape[-2], shape[-1]
    bound = math.sqrt(6.0 / (fan_in + fan_out))
    return jax.random.uniform(key, shape, jnp.float32, -bound, bound)


def make_params(key):
    ks = iter(jax.random.split(key, 64))
    p = {}
    # image_proj
    p["wp"] = _xavier(next(ks), (INPUT_DIM, HIDDEN_DIM))
    p["bp"] = jnp.zeros((1, HIDDEN_DIM), jnp.float32)
    p["gp"] = jnp.ones((1, HIDDEN_DIM), jnp.float32)
    p["bep"] = jnp.zeros((1, HIDDEN_DIM), jnp.float32)
    # sinusoidal positional encoding (S, H)
    pos = jnp.arange(SEQ_LEN, dtype=jnp.float32)[:, None]
    div = jnp.exp(jnp.arange(0, HIDDEN_DIM, 2, dtype=jnp.float32)
                  * (-math.log(10000.0) / HIDDEN_DIM))
    pe = jnp.zeros((SEQ_LEN, HIDDEN_DIM), jnp.float32)
    pe = pe.at[:, 0::2].set(jnp.sin(pos * div))
    pe = pe.at[:, 1::2].set(jnp.cos(pos * div))
    p["pe"] = pe
    # transformer layers (stacked over L)
    for name, shp in [
        ("wq", (HIDDEN_DIM, HIDDEN_DIM)), ("wk", (HIDDEN_DIM, HIDDEN_DIM)),
        ("wv", (HIDDEN_DIM, HIDDEN_DIM)), ("wo", (HIDDEN_DIM, HIDDEN_DIM)),
        ("w1", (HIDDEN_DIM, FF_DIM)), ("w2", (FF_DIM, HIDDEN_DIM)),
    ]:
        p[name] = jnp.stack([_xavier(next(ks), shp) for _ in range(NUM_LAYERS)])
    for name, width in [("bq", HIDDEN_DIM), ("bk", HIDDEN_DIM), ("bv", HIDDEN_DIM),
                        ("bo", HIDDEN_DIM), ("b1", FF_DIM), ("b2", HIDDEN_DIM),
                        ("be1", HIDDEN_DIM), ("be2", HIDDEN_DIM)]:
        p[name] = jnp.zeros((NUM_LAYERS, 1, width), jnp.float32)
    for name, width in [("g1", HIDDEN_DIM), ("g2", HIDDEN_DIM)]:
        p[name] = jnp.ones((NUM_LAYERS, 1, width), jnp.float32)
    # classifier
    p["wc1"] = _xavier(next(ks), (HIDDEN_DIM, OUT_FEATS))
    p["bc1"] = jnp.zeros((1, OUT_FEATS), jnp.float32)
    p["gc"] = jnp.ones((1, OUT_FEATS), jnp.float32)
    p["bec"] = jnp.zeros((1, OUT_FEATS), jnp.float32)
    p["wc2"] = _xavier(next(ks), (OUT_FEATS, NUM_CLASSES))
    p["bc2"] = jnp.zeros((1, NUM_CLASSES), jnp.float32)
    return p


def pack_params(p):
    """Pack every parameter + precomputed constant into ONE lane-dense f32 slab."""
    slab = jnp.zeros((SLAB_ROWS, OUT_LANES), jnp.float32)

    def put(slab, name, arr):
        off, rows, cols = LAYOUT[name]
        assert arr.shape == (rows, cols), (name, arr.shape, (rows, cols))
        return slab.at[off:off + rows, 0:cols].set(arr.astype(jnp.float32))

    slab = put(slab, "wp", p["wp"])
    slab = put(slab, "projv", jnp.concatenate([p["bp"], p["gp"], p["bep"]], axis=0))
    slab = put(slab, "pe", jnp.tile(p["pe"], (BATCH, 1)))                # (B*S, H)

    # additive block-diagonal mask over (head, batch): 0 where allowed, -1e30 else
    r = jnp.arange(NH_BS)
    same_block = (r[:, None] // SEQ_LEN) == (r[None, :] // SEQ_LEN)
    slab = put(slab, "mask",
               jnp.where(same_block, 0.0, -1e30).astype(jnp.float32))

    # temporal mean-pooling matrix (8, B*S); rows >= B stay zero
    pool = (jnp.arange(OUT_ROWS)[:, None] == (jnp.arange(BS)[None, :] // SEQ_LEN)
            ).astype(jnp.float32) * (1.0 / SEQ_LEN)
    slab = put(slab, "pool", pool)

    scale = 1.0 / math.sqrt(HEAD_DIM)
    for l in range(NUM_LAYERS):
        # fold the 1/sqrt(head_dim) scale into Q weights & bias (parameter transform)
        wqkv = jnp.concatenate([p["wq"][l] * scale, p["wk"][l], p["wv"][l]], axis=-1)
        bqkv = jnp.concatenate([p["bq"][l] * scale, p["bk"][l], p["bv"][l]], axis=-1)
        slab = put(slab, f"wqkv{l}", wqkv)
        slab = put(slab, f"bqkv{l}", bqkv)
        slab = put(slab, f"wo{l}", p["wo"][l])
        slab = put(slab, f"lvec{l}", jnp.concatenate(
            [p["bo"][l], p["g1"][l], p["be1"][l], p["b2"][l], p["g2"][l], p["be2"][l]],
            axis=0))
        slab = put(slab, f"w1{l}", p["w1"][l])
        slab = put(slab, f"b1{l}", p["b1"][l])
        slab = put(slab, f"w2{l}", p["w2"][l])

    slab = put(slab, "wc1", p["wc1"])
    slab = put(slab, "cvec", jnp.concatenate([p["bc1"], p["gc"], p["bec"]], axis=0))
    slab = put(slab, "wc2", jnp.zeros((OUT_FEATS, OUT_LANES), jnp.float32
                                      ).at[:, :NUM_CLASSES].set(p["wc2"]))
    slab = put(slab, "bc2", jnp.zeros((1, OUT_LANES), jnp.float32
                                      ).at[:, :NUM_CLASSES].set(p["bc2"]))
    return slab


# ----------------------------- pure-JAX reference ----------------------------
def reference_forward(x, p):
    def ln(x, g, b):
        mu = jnp.mean(x, axis=-1, keepdims=True)
        var = jnp.mean((x - mu) ** 2, axis=-1, keepdims=True)
        return (x - mu) / jnp.sqrt(var + EPS) * g + b

    h = jnp.einsum("bsd,dh->bsh", x, p["wp"]) + p["bp"]
    h = ln(h, p["gp"], p["bep"])
    hd = HIDDEN_DIM // NUM_HEADS
    for l in range(NUM_LAYERS):
        xin = h + p["pe"] if POS_ENC else h
        q = jnp.einsum("bsh,hk->bsk", xin, p["wq"][l]) + p["bq"][l]
        k = jnp.einsum("bsh,hk->bsk", xin, p["wk"][l]) + p["bk"][l]
        v = jnp.einsum("bsh,hk->bsk", xin, p["wv"][l]) + p["bv"][l]
        outs = []
        for hh in range(NUM_HEADS):
            lo, hi = hh * hd, (hh + 1) * hd
            s = jnp.einsum("bqd,bkd->bqk", q[..., lo:hi], k[..., lo:hi]) / math.sqrt(hd)
            outs.append(jnp.einsum("bqk,bkd->bqd", jax.nn.softmax(s, -1), v[..., lo:hi]))
        attn = jnp.einsum("bsh,hk->bsk", jnp.concatenate(outs, -1), p["wo"][l]) + p["bo"][l]
        y = ln(xin + attn, p["g1"][l], p["be1"][l])
        ff = jax.nn.relu(jnp.einsum("bsh,hf->bsf", y, p["w1"][l]) + p["b1"][l])
        ff = jnp.einsum("bsf,fh->bsh", ff, p["w2"][l]) + p["b2"][l]
        h = h + ln(y + ff, p["g2"][l], p["be2"][l])
    pooled = jnp.mean(h, axis=1)
    c = ln(pooled @ p["wc1"] + p["bc1"], p["gc"], p["bec"])
    c = jax.nn.gelu(c, approximate=False)
    return c @ p["wc2"] + p["bc2"]


# ----------------------------- main -------------------------------------------
if __name__ == "__main__":
    key = jax.random.PRNGKey(0)
    kx, kp = jax.random.split(key)
    x = jax.random.normal(kx, (BATCH, SEQ_LEN, INPUT_DIM), jnp.float32)
    params = make_params(kp)
    slab = pack_params(params)

    out = videoformer_forward(x, slab)
    out = jax.block_until_ready(out)

    ref = reference_forward(x, params)
    assert out.shape == (BATCH, NUM_CLASSES)
    assert jnp.allclose(out, ref, atol=1e-4, rtol=1e-4), (out, ref)

    print("KERNEL_OK")
</pallas_src>

<mosaic_0001>
module attributes {stable_mosaic.version = 11 : i64} {
  func.func @videoformer_kernel(%arg0: memref<16x64xf32, #tpu.memory_space<vmem>>, %arg1: memref<704x128xf32, #tpu.memory_space<vmem>>, %arg2: memref<8x128xf32, #tpu.memory_space<vmem>>) attributes {dimension_semantics = [], scalar_prefetch = 0 : i64, scratch_operands = 0 : i64, tpu.core_type = #tpu.core_type<tc>} {
    %c0 = arith.constant 0 : index
    %c0_0 = arith.constant 0 : index
    %0 = vector.load %arg0[%c0, %c0_0] : memref<16x64xf32, #tpu.memory_space<vmem>>, vector<16x64xf32>
    %c64 = arith.constant 64 : index
    %c0_1 = arith.constant 0 : index
    %1 = vector.load %arg1[%c64, %c0_1] : memref<704x128xf32, #tpu.memory_space<vmem>>, vector<3x32xf32>
    %c0_2 = arith.constant 0 : index
    %c0_3 = arith.constant 0 : index
    %2 = vector.load %arg1[%c0_2, %c0_3] : memref<704x128xf32, #tpu.memory_space<vmem>>, vector<64x32xf32>
    %cst = arith.constant dense<0.000000e+00> : vector<16x32xf32>
    %3 = tpu.matmul %0, %2, %cst {dimension_numbers = #tpu.dot_dimension_numbers<[1], [0], [0], [1], [0, 0, 1, 1], [], []>} : vector<16x64xf32>, vector<64x32xf32>, vector<16x32xf32> -> vector<16x32xf32>
    %4 = vector.extract_strided_slice %1 {offsets = [0, 0], sizes = [1, 32], strides = [1, 1]} : vector<3x32xf32> to vector<1x32xf32>
    %5 = vector.broadcast %4 : vector<1x32xf32> to vector<16x32xf32>
    %6 = arith.addf %3, %5 : vector<16x32xf32>
    %7 = vector.extract_strided_slice %1 {offsets = [1, 0], sizes = [1, 32], strides = [1, 1]} : vector<3x32xf32> to vector<1x32xf32>
    %8 = vector.extract_strided_slice %1 {offsets = [2, 0], sizes = [1, 32], strides = [1, 1]} : vector<3x32xf32> to vector<1x32xf32>
    %cst_4 = arith.constant dense<0.000000e+00> : vector<16xf32>
    %9 = vector.multi_reduction <add>, %6, %cst_4 [1] : vector<16x32xf32> to vector<16xf32>
    %10 = vector.shape_cast %9 : vector<16xf32> to vector<16x1xf32>
    %cst_5 = arith.constant 3.200000e+01 : f32
    %11 = vector.broadcast %cst_5 : f32 to vector<16x1xf32>
    %12 = arith.divf %10, %11 : vector<16x1xf32>
    %13 = vector.broadcast %12 : vector<16x1xf32> to vector<16x32xf32>
    %14 = arith.subf %6, %13 : vector<16x32xf32>
    %15 = arith.mulf %14, %14 : vector<16x32xf32>
    %cst_6 = arith.constant dense<0.000000e+00> : vector<16xf32>
    %16 = vector.multi_reduction <add>, %15, %cst_6 [1] : vector<16x32xf32> to vector<16xf32>
    %17 = vector.shape_cast %16 : vector<16xf32> to vector<16x1xf32>
    %cst_7 = arith.constant 3.200000e+01 : f32
    %18 = vector.broadcast %cst_7 : f32 to vector<16x1xf32>
    %19 = arith.divf %17, %18 : vector<16x1xf32>
    %20 = vector.broadcast %12 : vector<16x1xf32> to vector<16x32xf32>
    %21 = arith.subf %6, %20 : vector<16x32xf32>
    %cst_8 = arith.constant 9.99999974E-6 : f32
    %22 = vector.broadcast %cst_8 : f32 to vector<16x1xf32>
    %23 = arith.addf %19, %22 : vector<16x1xf32>
    %24 = math.rsqrt %23 : vector<16x1xf32>
    %25 = vector.broadcast %24 : vector<16x1xf32> to vector<16x32xf32>
    %26 = arith.mulf %21, %25 : vector<16x32xf32>
    %27 = vector.broadcast %7 : vector<1x32xf32> to vector<16x32xf32>
    %28 = arith.mulf %26, %27 : vector<16x32xf32>
    %29 = vector.broadcast %8 : vector<1x32xf32> to vector<16x32xf32>
    %30 = arith.addf %28, %29 : vector<16x32xf32>
    %c72 = arith.constant 72 : index
    %c0_9 = arith.constant 0 : index
    %31 = vector.load %arg1[%c72, %c0_9] : memref<704x128xf32, #tpu.memory_space<vmem>>, vector<16x32xf32>
    %c88 = arith.constant 88 : index
    %c0_10 = arith.constant 0 : index
    %32 = vector.load %arg1[%c88, %c0_10] : memref<704x128xf32, #tpu.memory_space<vmem>>, vector<32x32xf32>
    %c200 = arith.constant 200 : index
    %c0_11 = arith.constant 0 : index
    %33 = vector.load %arg1[%c200, %c0_11] : memref<704x128xf32, #tpu.memory_space<vmem>>, vector<6x32xf32>
    %34 = arith.addf %30, %31 : vector<16x32xf32>
    %c128 = arith.constant 128 : index
    %c0_12 = arith.constant 0 : index
    %35 = vector.load %arg1[%c128, %c0_12] : memref<704x128xf32, #tpu.memory_space<vmem>>, vector<32x96xf32>
    %cst_13 = arith.constant dense<0.000000e+00> : vector<16x96xf32>
    %36 = tpu.matmul %34, %35, %cst_13 {dimension_numbers = #tpu.dot_dimension_numbers<[1], [0], [0], [1], [0, 0, 1, 1], [], []>} : vector<16x32xf32>, vector<32x96xf32>, vector<16x96xf32> -> vector<16x96xf32>
    %c160 = arith.constant 160 : index
    %c0_14 = arith.constant 0 : index
    %37 = vector.load %arg1[%c160, %c0_14] : memref<704x128xf32, #tpu.memory_space<vmem>>, vector<1x96xf32>
    %38 = vector.broadcast %37 : vector<1x96xf32> to vector<16x96xf32>
    %39 = arith.addf %36, %38 : vector<16x96xf32>
    %40 = vector.extract_strided_slice %39 {offsets = [0, 0], sizes = [16, 32], strides = [1, 1]} : vector<16x96xf32> to vector<16x32xf32>
    %41 = vector.extract_strided_slice %39 {offsets = [0, 32], sizes = [16, 32], strides = [1, 1]} : vector<16x96xf32> to vector<16x32xf32>
    %42 = vector.extract_strided_slice %39 {offsets = [0, 64], sizes = [16, 32], strides = [1, 1]} : vector<16x96xf32> to vector<16x32xf32>
    %43 = vector.extract_strided_slice %40 {offsets = [0, 0], sizes = [16, 16], strides = [1, 1]} : vector<16x32xf32> to vector<16x16xf32>
    %44 = vector.extract_strided_slice %40 {offsets = [0, 16], sizes = [16, 16], strides = [1, 1]} : vector<16x32xf32> to vector<16x16xf32>
    %45 = tpu.concatenate %43, %44 in 0 : vector<16x16xf32>, vector<16x16xf32> -> vector<32x16xf32>
    %46 = vector.extract_strided_slice %41 {offsets = [0, 0], sizes = [16, 16], strides = [1, 1]} : vector<16x32xf32> to vector<16x16xf32>
    %47 = vector.extract_strided_slice %41 {offsets = [0, 16], sizes = [16, 16], strides = [1, 1]} : vector<16x32xf32> to vector<16x16xf32>
    %48 = tpu.concatenate %46, %47 in 0 : vector<16x16xf32>, vector<16x16xf32> -> vector<32x16xf32>
    %49 = vector.extract_strided_slice %42 {offsets = [0, 0], sizes = [16, 16], strides = [1, 1]} : vector<16x32xf32> to vector<16x16xf32>
    %50 = vector.extract_strided_slice %42 {offsets = [0, 16], sizes = [16, 16], strides = [1, 1]} : vector<16x32xf32> to vector<16x16xf32>
    %51 = tpu.concatenate %49, %50 in 0 : vector<16x16xf32>, vector<16x16xf32> -> vector<32x16xf32>
    %cst_15 = arith.constant dense<0.000000e+00> : vector<32x32xf32>
    %52 = tpu.matmul %45, %48, %cst_15 {dimension_numbers = #tpu.dot_dimension_numbers<[1], [1], [0], [0], [0, 0, 1, 0], [], []>} : vector<32x16xf32>, vector<32x16xf32>, vector<32x32xf32> -> vector<32x32xf32>
    %53 = arith.addf %52, %32 : vector<32x32xf32>
    %cst_16 = arith.constant dense<0xFF800000> : vector<32xf32>
    %54 = vector.multi_reduction <maximumf>, %53, %cst_16 [1] : vector<32x32xf32> to vector<32xf32>
    %55 = vector.shape_cast %54 : vector<32xf32> to vector<32x1xf32>
    %56 = vector.broadcast %55 : vector<32x1xf32> to vector<32x32xf32>
    %57 = arith.subf %53, %56 : vector<32x32xf32>
    %58 = math.exp %57 : vector<32x32xf32>
    %cst_17 = arith.constant dense<0.000000e+00> : vector<32xf32>
    %59 = vector.multi_reduction <add>, %58, %cst_17 [1] : vector<32x32xf32> to vector<32xf32>
    %60 = vector.shape_cast %59 : vector<32xf32> to vector<32x1xf32>
    %cst_18 = arith.constant 1.000000e+00 : f32
    %61 = vector.broadcast %cst_18 : f32 to vector<32x1xf32>
    %62 = arith.divf %61, %60 : vector<32x1xf32>
    %63 = vector.broadcast %62 : vector<32x1xf32> to vector<32x32xf32>
    %64 = arith.mulf %58, %63 : vector<32x32xf32>
    %cst_19 = arith.constant dense<0.000000e+00> : vector<32x16xf32>
    %65 = tpu.matmul %64, %51, %cst_19 {dimension_numbers = #tpu.dot_dimension_numbers<[1], [0], [0], [1], [0, 0, 1, 1], [], []>} : vector<32x32xf32>, vector<32x16xf32>, vector<32x16xf32> -> vector<32x16xf32>
    %66 = vector.extract_strided_slice %65 {offsets = [0, 0], sizes = [16, 16], strides = [1, 1]} : vector<32x16xf32> to vector<16x16xf32>
    %67 = vector.extract_strided_slice %65 {offsets = [16, 0], sizes = [16, 16], strides = [1, 1]} : vector<32x16xf32> to vector<16x16xf32>
    %68 = tpu.concatenate %66, %67 in 1 : vector<16x16xf32>, vector<16x16xf32> -> vector<16x32xf32>
    %c168 = arith.constant 168 : index
    %c0_20 = arith.constant 0 : index
    %69 = vector.load %arg1[%c168, %c0_20] : memref<704x128xf32, #tpu.memory_space<vmem>>, vector<32x32xf32>
    %cst_21 = arith.constant dense<0.000000e+00> : vector<16x32xf32>
    %70 = tpu.matmul %68, %69, %cst_21 {dimension_numbers = #tpu.dot_dimension_numbers<[1], [0], [0], [1], [0, 0, 1, 1], [], []>} : vector<16x32xf32>, vector<32x32xf32>, vector<16x32xf32> -> vector<16x32xf32>
    %71 = vector.extract_strided_slice %33 {offsets = [0, 0], sizes = [1, 32], strides = [1, 1]} : vector<6x32xf32> to vector<1x32xf32>
    %72 = vector.broadcast %71 : vector<1x32xf32> to vector<16x32xf32>
    %73 = arith.addf %70, %72 : vector<16x32xf32>
    %74 = arith.addf %34, %73 : vector<16x32xf32>
    %75 = vector.extract_strided_slice %33 {offsets = [1, 0], sizes = [1, 32], strides = [1, 1]} : vector<6x32xf32> to vector<1x32xf32>
    %76 = vector.extract_strided_slice %33 {offsets = [2, 0], sizes = [1, 32], strides = [1, 1]} : vector<6x32xf32> to vector<1x32xf32>
    %cst_22 = arith.constant dense<0.000000e+00> : vector<16xf32>
    %77 = vector.multi_reduction <add>, %74, %cst_22 [1] : vector<16x32xf32> to vector<16xf32>
    %78 = vector.shape_cast %77 : vector<16xf32> to vector<16x1xf32>
    %cst_23 = arith.constant 3.200000e+01 : f32
    %79 = vector.broadcast %cst_23 : f32 to vector<16x1xf32>
    %80 = arith.divf %78, %79 : vector<16x1xf32>
    %81 = vector.broadcast %80 : vector<16x1xf32> to vector<16x32xf32>
    %82 = arith.subf %74, %81 : vector<16x32xf32>
    %83 = arith.mulf %82, %82 : vector<16x32xf32>
    %cst_24 = arith.constant dense<0.000000e+00> : vector<16xf32>
    %84 = vector.multi_reduction <add>, %83, %cst_24 [1] : vector<16x32xf32> to vector<16xf32>
    %85 = vector.shape_cast %84 : vector<16xf32> to vector<16x1xf32>
    %cst_25 = arith.constant 3.200000e+01 : f32
    %86 = vector.broadcast %cst_25 : f32 to vector<16x1xf32>
    %87 = arith.divf %85, %86 : vector<16x1xf32>
    %88 = vector.broadcast %80 : vector<16x1xf32> to vector<16x32xf32>
    %89 = arith.subf %74, %88 : vector<16x32xf32>
    %cst_26 = arith.constant 9.99999974E-6 : f32
    %90 = vector.broadcast %cst_26 : f32 to vector<16x1xf32>
    %91 = arith.addf %87, %90 : vector<16x1xf32>
    %92 = math.rsqrt %91 : vector<16x1xf32>
    %93 = vector.broadcast %92 : vector<16x1xf32> to vector<16x32xf32>
    %94 = arith.mulf %89, %93 : vector<16x32xf32>
    %95 = vector.broadcast %75 : vector<1x32xf32> to vector<16x32xf32>
    %96 = arith.mulf %94, %95 : vector<16x32xf32>
    %97 = vector.broadcast %76 : vector<1x32xf32> to vector<16x32xf32>
    %98 = arith.addf %96, %97 : vector<16x32xf32>
    %c208 = arith.constant 208 : index
    %c0_27 = arith.constant 0 : index
    %99 = vector.load %arg1[%c208, %c0_27] : memref<704x128xf32, #tpu.memory_space<vmem>>, vector<32x128xf32>
    %cst_28 = arith.constant dense<0.000000e+00> : vector<16x128xf32>
    %100 = tpu.matmul %98, %99, %cst_28 {dimension_numbers = #tpu.dot_dimension_numbers<[1], [0], [0], [1], [0, 0, 1, 1], [], []>} : vector<16x32xf32>, vector<32x128xf32>, vector<16x128xf32> -> vector<16x128xf32>
    %c240 = arith.constant 240 : index
    %c0_29 = arith.constant 0 : index
    %101 = vector.load %arg1[%c240, %c0_29] : memref<704x128xf32, #tpu.memory_space<vmem>>, vector<1x128xf32>
    %102 = vector.broadcast %101 : vector<1x128xf32> to vector<16x128xf32>
    %103 = arith.addf %100, %102 : vector<16x128xf32>
    %cst_30 = arith.constant 0.000000e+00 : f32
    %104 = vector.broadcast %cst_30 : f32 to vector<16x128xf32>
    %105 = arith.maximumf %103, %104 : vector<16x128xf32>
    %c248 = arith.constant 248 : index
    %c0_31 = arith.constant 0 : index
    %106 = vector.load %arg1[%c248, %c0_31] : memref<704x128xf32, #tpu.memory_space<vmem>>, vector<128x32xf32>
    %cst_32 = arith.constant dense<0.000000e+00> : vector<16x32xf32>
    %107 = tpu.matmul %105, %106, %cst_32 {dimension_numbers = #tpu.dot_dimension_numbers<[1], [0], [0], [1], [0, 0, 1, 1], [], []>} : vector<16x128xf32>, vector<128x32xf32>, vector<16x32xf32> -> vector<16x32xf32>
    %108 = vector.extract_strided_slice %33 {offsets = [3, 0], sizes = [1, 32], strides = [1, 1]} : vector<6x32xf32> to vector<1x32xf32>
    %109 = vector.broadcast %108 : vector<1x32xf32> to vector<16x32xf32>
    %110 = arith.addf %107, %109 : vector<16x32xf32>
    %111 = arith.addf %98, %110 : vector<16x32xf32>
    %112 = vector.extract_strided_slice %33 {offsets = [4, 0], sizes = [1, 32], strides = [1, 1]} : vector<6x32xf32> to vector<1x32xf32>
    %113 = vector.extract_strided_slice %33 {offsets = [5, 0], sizes = [1, 32], strides = [1, 1]} : vector<6x32xf32> to vector<1x32xf32>
    %cst_33 = arith.constant dense<0.000000e+00> : vector<16xf32>
    %114 = vector.multi_reduction <add>, %111, %cst_33 [1] : vector<16x32xf32> to vector<16xf32>
    %115 = vector.shape_cast %114 : vector<16xf32> to vector<16x1xf32>
    %cst_34 = arith.constant 3.200000e+01 : f32
    %116 = vector.broadcast %cst_34 : f32 to vector<16x1xf32>
    %117 = arith.divf %115, %116 : vector<16x1xf32>
    %118 = vector.broadcast %117 : vector<16x1xf32> to vector<16x32xf32>
    %119 = arith.subf %111, %118 : vector<16x32xf32>
    %120 = arith.mulf %119, %119 : vector<16x32xf32>
    %cst_35 = arith.constant dense<0.000000e+00> : vector<16xf32>
    %121 = vector.multi_reduction <add>, %120, %cst_35 [1] : vector<16x32xf32> to vector<16xf32>
    %122 = vector.shape_cast %121 : vector<16xf32> to vector<16x1xf32>
    %cst_36 = arith.constant 3.200000e+01 : f32
    %123 = vector.broadcast %cst_36 : f32 to vector<16x1xf32>
    %124 = arith.divf %122, %123 : vector<16x1xf32>
    %125 = vector.broadcast %117 : vector<16x1xf32> to vector<16x32xf32>
    %126 = arith.subf %111, %125 : vector<16x32xf32>
    %cst_37 = arith.constant 9.99999974E-6 : f32
    %127 = vector.broadcast %cst_37 : f32 to vector<16x1xf32>
    %128 = arith.addf %124, %127 : vector<16x1xf32>
    %129 = math.rsqrt %128 : vector<16x1xf32>
    %130 = vector.broadcast %129 : vector<16x1xf32> to vector<16x32xf32>
    %131 = arith.mulf %126, %130 : vector<16x32xf32>
    %132 = vector.broadcast %112 : vector<1x32xf32> to vector<16x32xf32>
    %133 = arith.mulf %131, %132 : vector<16x32xf32>
    %134 = vector.broadcast %113 : vector<1x32xf32> to vector<16x32xf32>
    %135 = arith.addf %133, %134 : vector<16x32xf32>
    %136 = arith.addf %30, %135 : vector<16x32xf32>
    %c448 = arith.constant 448 : index
    %c0_38 = arith.constant 0 : index
    %137 = vector.load %arg1[%c448, %c0_38] : memref<704x128xf32, #tpu.memory_space<vmem>>, vector<6x32xf32>
    %138 = arith.addf %136, %31 : vector<16x32xf32>
    %c376 = arith.constant 376 : index
    %c0_39 = arith.constant 0 : index
    %139 = vector.load %arg1[%c376, %c0_39] : memref<704x128xf32, #tpu.memory_space<vmem>>, vector<32x96xf32>
    %cst_40 = arith.constant dense<0.000000e+00> : vector<16x96xf32>
    %140 = tpu.matmul %138, %139, %cst_40 {dimension_numbers = #tpu.dot_dimension_numbers<[1], [0], [0], [1], [0, 0, 1, 1], [], []>} : vector<16x32xf32>, vector<32x96xf32>, vector<16x96xf32> -> vector<16x96xf32>
    %c408 = arith.constant 408 : index
    %c0_41 = arith.constant 0 : index
    %141 = vector.load %arg1[%c408, %c0_41] : memref<704x128xf32, #tpu.memory_space<vmem>>, vector<1x96xf32>
    %142 = vector.broadcast %141 : vector<1x96xf32> to vector<16x96xf32>
    %143 = arith.addf %140, %142 : vector<16x96xf32>
    %144 = vector.extract_strided_slice %143 {offsets = [0, 0], sizes = [16, 32], strides = [1, 1]} : vector<16x96xf32> to vector<16x32xf32>
    %145 = vector.extract_strided_slice %143 {offsets = [0, 32], sizes = [16, 32], strides = [1, 1]} : vector<16x96xf32> to vector<16x32xf32>
    %146 = vector.extract_strided_slice %143 {offsets = [0, 64], sizes = [16, 32], strides = [1, 1]} : vector<16x96xf32> to vector<16x32xf32>
    %147 = vector.extract_strided_slice %144 {offsets = [0, 0], sizes = [16, 16], strides = [1, 1]} : vector<16x32xf32> to vector<16x16xf32>
    %148 = vector.extract_strided_slice %144 {offsets = [0, 16], sizes = [16, 16], strides = [1, 1]} : vector<16x32xf32> to vector<16x16xf32>
    %149 = tpu.concatenate %147, %148 in 0 : vector<16x16xf32>, vector<16x16xf32> -> vector<32x16xf32>
    %150 = vector.extract_strided_slice %145 {offsets = [0, 0], sizes = [16, 16], strides = [1, 1]} : vector<16x32xf32> to vector<16x16xf32>
    %151 = vector.extract_strided_slice %145 {offsets = [0, 16], sizes = [16, 16], strides = [1, 1]} : vector<16x32xf32> to vector<16x16xf32>
    %152 = tpu.concatenate %150, %151 in 0 : vector<16x16xf32>, vector<16x16xf32> -> vector<32x16xf32>
    %153 = vector.extract_strided_slice %146 {offsets = [0, 0], sizes = [16, 16], strides = [1, 1]} : vector<16x32xf32> to vector<16x16xf32>
    %154 = vector.extract_strided_slice %146 {offsets = [0, 16], sizes = [16, 16], strides = [1, 1]} : vector<16x32xf32> to vector<16x16xf32>
    %155 = tpu.concatenate %153, %154 in 0 : vector<16x16xf32>, vector<16x16xf32> -> vector<32x16xf32>
    %cst_42 = arith.constant dense<0.000000e+00> : vector<32x32xf32>
    %156 = tpu.matmul %149, %152, %cst_42 {dimension_numbers = #tpu.dot_dimension_numbers<[1], [1], [0], [0], [0, 0, 1, 0], [], []>} : vector<32x16xf32>, vector<32x16xf32>, vector<32x32xf32> -> vector<32x32xf32>
    %157 = arith.addf %156, %32 : vector<32x32xf32>
    %cst_43 = arith.constant dense<0xFF800000> : vector<32xf32>
    %158 = vector.multi_reduction <maximumf>, %157, %cst_43 [1] : vector<32x32xf32> to vector<32xf32>
    %159 = vector.shape_cast %158 : vector<32xf32> to vector<32x1xf32>
    %160 = vector.broadcast %159 : vector<32x1xf32> to vector<32x32xf32>
    %161 = arith.subf %157, %160 : vector<32x32xf32>
    %162 = math.exp %161 : vector<32x32xf32>
    %cst_44 = arith.constant dense<0.000000e+00> : vector<32xf32>
    %163 = vector.multi_reduction <add>, %162, %cst_44 [1] : vector<32x32xf32> to vector<32xf32>
    %164 = vector.shape_cast %163 : vector<32xf32> to vector<32x1xf32>
    %cst_45 = arith.constant 1.000000e+00 : f32
    %165 = vector.broadcast %cst_45 : f32 to vector<32x1xf32>
    %166 = arith.divf %165, %164 : vector<32x1xf32>
    %167 = vector.broadcast %166 : vector<32x1xf32> to vector<32x32xf32>
    %168 = arith.mulf %162, %167 : vector<32x32xf32>
    %cst_46 = arith.constant dense<0.000000e+00> : vector<32x16xf32>
    %169 = tpu.matmul %168, %155, %cst_46 {dimension_numbers = #tpu.dot_dimension_numbers<[1], [0], [0], [1], [0, 0, 1, 1], [], []>} : vector<32x32xf32>, vector<32x16xf32>, vector<32x16xf32> -> vector<32x16xf32>
    %170 = vector.extract_strided_slice %169 {offsets = [0, 0], sizes = [16, 16], strides = [1, 1]} : vector<32x16xf32> to vector<16x16xf32>
    %171 = vector.extract_strided_slice %169 {offsets = [16, 0], sizes = [16, 16], strides = [1, 1]} : vector<32x16xf32> to vector<16x16xf32>
    %172 = tpu.concatenate %170, %171 in 1 : vector<16x16xf32>, vector<16x16xf32> -> vector<16x32xf32>
    %c416 = arith.constant 416 : index
    %c0_47 = arith.constant 0 : index
    %173 = vector.load %arg1[%c416, %c0_47] : memref<704x128xf32, #tpu.memory_space<vmem>>, vector<32x32xf32>
    %cst_48 = arith.constant dense<0.000000e+00> : vector<16x32xf32>
    %174 = tpu.matmul %172, %173, %cst_48 {dimension_numbers = #tpu.dot_dimension_numbers<[1], [0], [0], [1], [0, 0, 1, 1], [], []>} : vector<16x32xf32>, vector<32x32xf32>, vector<16x32xf32> -> vector<16x32xf32>
    %175 = vector.extract_strided_slice %137 {offsets = [0, 0], sizes = [1, 32], strides = [1, 1]} : vector<6x32xf32> to vector<1x32xf32>
    %176 = vector.broadcast %175 : vector<1x32xf32> to vector<16x32xf32>
    %177 = arith.addf %174, %176 : vector<16x32xf32>
    %178 = arith.addf %138, %177 : vector<16x32xf32>
    %179 = vector.extract_strided_slice %137 {offsets = [1, 0], sizes = [1, 32], strides = [1, 1]} : vector<6x32xf32> to vector<1x32xf32>
    %180 = vector.extract_strided_slice %137 {offsets = [2, 0], sizes = [1, 32], strides = [1, 1]} : vector<6x32xf32> to vector<1x32xf32>
    %cst_49 = arith.constant dense<0.000000e+00> : vector<16xf32>
    %181 = vector.multi_reduction <add>, %178, %cst_49 [1] : vector<16x32xf32> to vector<16xf32>
    %182 = vector.shape_cast %181 : vector<16xf32> to vector<16x1xf32>
    %cst_50 = arith.constant 3.200000e+01 : f32
    %183 = vector.broadcast %cst_50 : f32 to vector<16x1xf32>
    %184 = arith.divf %182, %183 : vector<16x1xf32>
    %185 = vector.broadcast %184 : vector<16x1xf32> to vector<16x32xf32>
    %186 = arith.subf %178, %185 : vector<16x32xf32>
    %187 = arith.mulf %186, %186 : vector<16x32xf32>
    %cst_51 = arith.constant dense<0.000000e+00> : vector<16xf32>
    %188 = vector.multi_reduction <add>, %187, %cst_51 [1] : vector<16x32xf32> to vector<16xf32>
    %189 = vector.shape_cast %188 : vector<16xf32> to vector<16x1xf32>
    %cst_52 = arith.constant 3.200000e+01 : f32
    %190 = vector.broadcast %cst_52 : f32 to vector<16x1xf32>
    %191 = arith.divf %189, %190 : vector<16x1xf32>
    %192 = vector.broadcast %184 : vector<16x1xf32> to vector<16x32xf32>
    %193 = arith.subf %178, %192 : vector<16x32xf32>
    %cst_53 = arith.constant 9.99999974E-6 : f32
    %194 = vector.broadcast %cst_53 : f32 to vector<16x1xf32>
    %195 = arith.addf %191, %194 : vector<16x1xf32>
    %196 = math.rsqrt %195 : vector<16x1xf32>
    %197 = vector.broadcast %196 : vector<16x1xf32> to vector<16x32xf32>
    %198 = arith.mulf %193, %197 : vector<16x32xf32>
    %199 = vector.broadcast %179 : vector<1x32xf32> to vector<16x32xf32>
    %200 = arith.mulf %198, %199 : vector<16x32xf32>
    %201 = vector.broadcast %180 : vector<1x32xf32> to vector<16x32xf32>
    %202 = arith.addf %200, %201 : vector<16x32xf32>
    %c456 = arith.constant 456 : index
    %c0_54 = arith.constant 0 : index
    %203 = vector.load %arg1[%c456, %c0_54] : memref<704x128xf32, #tpu.memory_space<vmem>>, vector<32x128xf32>
    %cst_55 = arith.constant dense<0.000000e+00> : vector<16x128xf32>
    %204 = tpu.matmul %202, %203, %cst_55 {dimension_numbers = #tpu.dot_dimension_numbers<[1], [0], [0], [1], [0, 0, 1, 1], [], []>} : vector<16x32xf32>, vector<32x128xf32>, vector<16x128xf32> -> vector<16x128xf32>
    %c488 = arith.constant 488 : index
    %c0_56 = arith.constant 0 : index
    %205 = vector.load %arg1[%c488, %c0_56] : memref<704x128xf32, #tpu.memory_space<vmem>>, vector<1x128xf32>
    %206 = vector.broadcast %205 : vector<1x128xf32> to vector<16x128xf32>
    %207 = arith.addf %204, %206 : vector<16x128xf32>
    %cst_57 = arith.constant 0.000000e+00 : f32
    %208 = vector.broadcast %cst_57 : f32 to vector<16x128xf32>
    %209 = arith.maximumf %207, %208 : vector<16x128xf32>
    %c496 = arith.constant 496 : index
    %c0_58 = arith.constant 0 : index
    %210 = vector.load %arg1[%c496, %c0_58] : memref<704x128xf32, #tpu.memory_space<vmem>>, vector<128x32xf32>
    %cst_59 = arith.constant dense<0.000000e+00> : vector<16x32xf32>
    %211 = tpu.matmul %209, %210, %cst_59 {dimension_numbers = #tpu.dot_dimension_numbers<[1], [0], [0], [1], [0, 0, 1, 1], [], []>} : vector<16x128xf32>, vector<128x32xf32>, vector<16x32xf32> -> vector<16x32xf32>
    %212 = vector.extract_strided_slice %137 {offsets = [3, 0], sizes = [1, 32], strides = [1, 1]} : vector<6x32xf32> to vector<1x32xf32>
    %213 = vector.broadcast %212 : vector<1x32xf32> to vector<16x32xf32>
    %214 = arith.addf %211, %213 : vector<16x32xf32>
    %215 = arith.addf %202, %214 : vector<16x32xf32>
    %216 = vector.extract_strided_slice %137 {offsets = [4, 0], sizes = [1, 32], strides = [1, 1]} : vector<6x32xf32> to vector<1x32xf32>
    %217 = vector.extract_strided_slice %137 {offsets = [5, 0], sizes = [1, 32], strides = [1, 1]} : vector<6x32xf32> to vector<1x32xf32>
    %cst_60 = arith.constant dense<0.000000e+00> : vector<16xf32>
    %218 = vector.multi_reduction <add>, %215, %cst_60 [1] : vector<16x32xf32> to vector<16xf32>
    %219 = vector.shape_cast %218 : vector<16xf32> to vector<16x1xf32>
    %cst_61 = arith.constant 3.200000e+01 : f32
    %220 = vector.broadcast %cst_61 : f32 to vector<16x1xf32>
    %221 = arith.divf %219, %220 : vector<16x1xf32>
    %222 = vector.broadcast %221 : vector<16x1xf32> to vector<16x32xf32>
    %223 = arith.subf %215, %222 : vector<16x32xf32>
    %224 = arith.mulf %223, %223 : vector<16x32xf32>
    %cst_62 = arith.constant dense<0.000000e+00> : vector<16xf32>
    %225 = vector.multi_reduction <add>, %224, %cst_62 [1] : vector<16x32xf32> to vector<16xf32>
    %226 = vector.shape_cast %225 : vector<16xf32> to vector<16x1xf32>
    %cst_63 = arith.constant 3.200000e+01 : f32
    %227 = vector.broadcast %cst_63 : f32 to vector<16x1xf32>
    %228 = arith.divf %226, %227 : vector<16x1xf32>
    %229 = vector.broadcast %221 : vector<16x1xf32> to vector<16x32xf32>
    %230 = arith.subf %215, %229 : vector<16x32xf32>
    %cst_64 = arith.constant 9.99999974E-6 : f32
    %231 = vector.broadcast %cst_64 : f32 to vector<16x1xf32>
    %232 = arith.addf %228, %231 : vector<16x1xf32>
    %233 = math.rsqrt %232 : vector<16x1xf32>
    %234 = vector.broadcast %233 : vector<16x1xf32> to vector<16x32xf32>
    %235 = arith.mulf %230, %234 : vector<16x32xf32>
    %236 = vector.broadcast %216 : vector<1x32xf32> to vector<16x32xf32>
    %237 = arith.mulf %235, %236 : vector<16x32xf32>
    %238 = vector.broadcast %217 : vector<1x32xf32> to vector<16x32xf32>
    %239 = arith.addf %237, %238 : vector<16x32xf32>
    %240 = arith.addf %136, %239 : vector<16x32xf32>
    %c120 = arith.constant 120 : index
    %c0_65 = arith.constant 0 : index
    %241 = vector.load %arg1[%c120, %c0_65] : memref<704x128xf32, #tpu.memory_space<vmem>>, vector<8x16xf32>
    %cst_66 = arith.constant dense<0.000000e+00> : vector<8x32xf32>
    %242 = tpu.matmul %241, %240, %cst_66 {dimension_numbers = #tpu.dot_dimension_numbers<[1], [0], [0], [1], [0, 0, 1, 1], [], []>} : vector<8x16xf32>, vector<16x32xf32>, vector<8x32xf32> -> vector<8x32xf32>
    %c656 = arith.constant 656 : index
    %c0_67 = arith.constant 0 : index
    %243 = vector.load %arg1[%c656, %c0_67] : memref<704x128xf32, #tpu.memory_space<vmem>>, vector<3x32xf32>
    %c624 = arith.constant 624 : index
    %c0_68 = arith.constant 0 : index
    %244 = vector.load %arg1[%c624, %c0_68] : memref<704x128xf32, #tpu.memory_space<vmem>>, vector<32x32xf32>
    %cst_69 = arith.constant dense<0.000000e+00> : vector<8x32xf32>
    %245 = tpu.matmul %242, %244, %cst_69 {dimension_numbers = #tpu.dot_dimension_numbers<[1], [0], [0], [1], [0, 0, 1, 1], [], []>} : vector<8x32xf32>, vector<32x32xf32>, vector<8x32xf32> -> vector<8x32xf32>
    %246 = vector.extract_strided_slice %243 {offsets = [0, 0], sizes = [1, 32], strides = [1, 1]} : vector<3x32xf32> to vector<1x32xf32>
    %247 = vector.broadcast %246 : vector<1x32xf32> to vector<8x32xf32>
    %248 = arith.addf %245, %247 : vector<8x32xf32>
    %249 = vector.extract_strided_slice %243 {offsets = [1, 0], sizes = [1, 32], strides = [1, 1]} : vector<3x32xf32> to vector<1x32xf32>
    %250 = vector.extract_strided_slice %243 {offsets = [2, 0], sizes = [1, 32], strides = [1, 1]} : vector<3x32xf32> to vector<1x32xf32>
    %cst_70 = arith.constant dense<0.000000e+00> : vector<8xf32>
    %251 = vector.multi_reduction <add>, %248, %cst_70 [1] : vector<8x32xf32> to vector<8xf32>
    %252 = vector.shape_cast %251 : vector<8xf32> to vector<8x1xf32>
    %cst_71 = arith.constant 3.200000e+01 : f32
    %253 = vector.broadcast %cst_71 : f32 to vector<8x1xf32>
    %254 = arith.divf %252, %253 : vector<8x1xf32>
    %255 = vector.broadcast %254 : vector<8x1xf32> to vector<8x32xf32>
    %256 = arith.subf %248, %255 : vector<8x32xf32>
    %257 = arith.mulf %256, %256 : vector<8x32xf32>
    %cst_72 = arith.constant dense<0.000000e+00> : vector<8xf32>
    %258 = vector.multi_reduction <add>, %257, %cst_72 [1] : vector<8x32xf32> to vector<8xf32>
    %259 = vector.shape_cast %258 : vector<8xf32> to vector<8x1xf32>
    %cst_73 = arith.constant 3.200000e+01 : f32
    %260 = vector.broadcast %cst_73 : f32 to vector<8x1xf32>
    %261 = arith.divf %259, %260 : vector<8x1xf32>
    %262 = vector.broadcast %254 : vector<8x1xf32> to vector<8x32xf32>
    %263 = arith.subf %248, %262 : vector<8x32xf32>
    %cst_74 = arith.constant 9.99999974E-6 : f32
    %264 = vector.broadcast %cst_74 : f32 to vector<8x1xf32>
    %265 = arith.addf %261, %264 : vector<8x1xf32>
    %266 = math.rsqrt %265 : vector<8x1xf32>
    %267 = vector.broadcast %266 : vector<8x1xf32> to vector<8x32xf32>
    %268 = arith.mulf %263, %267 : vector<8x32xf32>
    %269 = vector.broadcast %249 : vector<1x32xf32> to vector<8x32xf32>
    %270 = arith.mulf %268, %269 : vector<8x32xf32>
    %271 = vector.broadcast %250 : vector<1x32xf32> to vector<8x32xf32>
    %272 = arith.addf %270, %271 : vector<8x32xf32>
    %cst_75 = arith.constant 5.000000e-01 : f32
    %273 = vector.broadcast %cst_75 : f32 to vector<8x32xf32>
    %274 = arith.mulf %273, %272 : vector<8x32xf32>
    %cst_76 = arith.constant 0.707106769 : f32
    %275 = vector.broadcast %cst_76 : f32 to vector<8x32xf32>
    %276 = arith.mulf %272, %275 : vector<8x32xf32>
    %277 = math.erf %276 : vector<8x32xf32>
    %cst_77 = arith.constant 1.000000e+00 : f32
    %278 = vector.broadcast %cst_77 : f32 to vector<8x32xf32>
    %279 = arith.addf %278, %277 : vector<8x32xf32>
    %280 = arith.mulf %274, %279 : vector<8x32xf32>
    %c664 = arith.constant 664 : index
    %c0_78 = arith.constant 0 : index
    %281 = vector.load %arg1[%c664, %c0_78] : memref<704x128xf32, #tpu.memory_space<vmem>>, vector<32x128xf32>
    %cst_79 = arith.constant dense<0.000000e+00> : vector<8x128xf32>
    %282 = tpu.matmul %280, %281, %cst_79 {dimension_numbers = #tpu.dot_dimension_numbers<[1], [0], [0], [1], [0, 0, 1, 1], [], []>} : vector<8x32xf32>, vector<32x128xf32>, vector<8x128xf32> -> vector<8x128xf32>
    %c696 = arith.constant 696 : index
    %c0_80 = arith.constant 0 : index
    %283 = vector.load %arg1[%c696, %c0_80] : memref<704x128xf32, #tpu.memory_space<vmem>>, vector<1x128xf32>
    %284 = vector.broadcast %283 : vector<1x128xf32> to vector<8x128xf32>
    %285 = arith.addf %282, %284 : vector<8x128xf32>
    %c0_81 = arith.constant 0 : index
    %c0_82 = arith.constant 0 : index
    %286 = vector.load %arg2[%c0_81, %c0_82] : memref<8x128xf32, #tpu.memory_space<vmem>>, vector<8x128xf32>
    tpu.vector_store %arg2[%c0_81, %c0_82], %285 {strides = array<i32>} : memref<8x128xf32, #tpu.memory_space<vmem>>, vector<8x128xf32>,
    return
  }
}

</mosaic_0001>

<bundles_post_ra>
// kernel: videoformer_forward.1
= control target key start
LH: loop header
LB: loop body
LE: loop exit
PB: predicated region body
PF: predicated region fallthrough
CT: control target
= control target key end

     0   :  { %7 = vsyncpa [#allocation3], 0  ;;  %s1766_s0 = inlined_call_operand.hbm [shape: f32[16,64], index: 0, kind: input, shape index: {}]   ;;  %s1767_s1 = inlined_call_operand.hbm [shape: f32[704,128], index: 1, kind: input, shape index: {}]   ;;  %s1768_s2 = inlined_call_operand.vmem [shape: f32[8,128], index: 2, kind: output, shape index: {}]  }
   0x1   :  { %s13_s11 = sshll.u32 %s1766_s0, 4  ;;  %s14_s11 = int_to_ptr.hbm [resolvable:$true] %s13_s11 }
   0x2   :  { %8 = vsyncpa [#allocation5], 0  ;;  %s1465_s12 = smov [#allocation2]   ;;  %s26_s16 = sshll.u32 %s1767_s1, 4  ;;  %s27_s16 = int_to_ptr.hbm [resolvable:$true] %s26_s16 }
   0x3   :  { %s15_s13 = sshll.u32 %s1465_s12, 4  ;;  %s1466_s17 = smov 128   ;;  %s16_s13 = int_to_ptr.vmem [resolvable:$true] %s15_s13 }
   0x4   :  { %s1467_s18 = smov 8   ;;  %s1468_s19 = smov [#allocation4]  }
   0x5   :  { %21 = dma.hbm_to_vmem [thread:$0]  %s14_s11, 256, %s16_s13, [#allocation3], %s1466_s17, %s1466_s17, %s1467_s18  }
   0x6   :  { %s28_s20 = sshll.u32 %s1468_s19, 4  ;;  %s29_s20 = int_to_ptr.vmem [resolvable:$true] %s28_s20 }
   0x7   :  { %34 = dma.hbm_to_vmem [thread:$0]  %s27_s16, 11264, %s29_s20, [#allocation5], %s1466_s17, %s1466_s17, %s1467_s18  }
   0x8   :  { %1461 = dma.done.wait [#allocation3], 256  }
   0x9   :  { %1462 = vsyncadd [#allocation3], 4294967040 }
   0xa   :  { %1463 = dma.done.wait [#allocation5], 11264  }
   0xb   :  { %1464 = vsyncadd [#allocation5], 4294956032  ;;  %v53_v0 = vld [vmem:[#allocation4 + $0x38] sm:$0xff]  ;;  %v52_v1 = vld [vmem:[#allocation4 + $0x30] sm:$0xff]  ;;  %vm55_vm0 = vcmask 523264   ;;  %vm85_vm1 = vcmask 261120  }
   0xc   :  { %70 = vmatpush.msra.mxu0 %v53_v0  ;;  %v51_v2 = vld [vmem:[#allocation4 + $0x28] sm:$0xff]  ;;  %v50_v3 = vld [vmem:[#allocation4 + $0x20] sm:$0xff]  ;;  %v49_v4 = vld [vmem:[#allocation4 + $0x18] sm:$0xff]  ;;  %v1469_v18 = vmov 32.0   ;;  %s1470_s0 = smov 112   ;;  %s1471_s1 = smov 96  }
   0xd   :  { %v48_v5 = vld [vmem:[#allocation4 + $0x10] sm:$0xff]  ;;  %v47_v6 = vld [vmem:[#allocation4 + $0x8] sm:$0xff]  ;;  %v46_v7 = vld [vmem:[#allocation4] sm:$0xff]  ;;  %1355 = vrcp.f32 %v1469_v18  ;;  %vm201_vm9 = vcmask 130048   ;;  %s1472_s21 = smov 64   ;;  %s1473_s22 = smov 16  }
   0xe   :  { %71 = vmatpush.msra.mxu0 %v52_v1  ;;  %v43_v8 = vld [vmem:[#allocation2] sm:$0xff]  ;;  %v44_v9 = vld [vmem:[#allocation2 + $0x8] sm:$0xff]  ;;  %v1495_v10 = vld [vmem:[#allocation4 + $0x40] sm:$0x7] }
   0xf   :  { %v54_v11 = vperm.slane %v1495_v10, 0  ;;  %v155_v35 = vld [vmem:[#allocation4 + $0x98] sm:$0xff]  ;;  %v154_v36 = vld [vmem:[#allocation4 + $0x90] sm:$0xff]  ;;  %v153_v37 = vld [vmem:[#allocation4 + $0x88] sm:$0xff]  ;;  %v137_v53 = vperm.slane %v1495_v10, 1  ;;  %v140_v56 = vperm.slane %v1495_v10, 2 }
  0x10   :  { %72 = vmatpush.msra.mxu0 %v51_v2  ;;  %176 = vmatpush.msra.mxu1 %v155_v35  ;;  %v152_v38 = vld [vmem:[#allocation4 + $0x80] sm:$0xff]  ;;  %v1510_v61 = vld [vmem:[#allocation4 + $0x48] sm:$0xff]  ;;  %v1554_v18 = vld [vmem:[#allocation4 + $0x58] sm:$0xff] }
  0x12   :  { %73 = vmatpush.msra.mxu0 %v50_v3  ;;  %177 = vmatpush.msra.mxu1 %v154_v36 }
  0x13   :  { %v1356_v19 = vpop.eup %1355 }
  0x14   :  { %74 = vmatpush.msra.mxu0 %v49_v4  ;;  %v93_v20 = vmul.f32 32.0, %v1356_v19  ;;  %vm97_vm2 = vweird.f32 %v1356_v19  ;;  %178 = vmatpush.msra.mxu1 %v153_v37  ;;  %v1520_v4 = vld [vmem:[#allocation4 + $0x50] sm:$0xff] }
  0x16   :  { %75 = vmatpush.msra.mxu0 %v48_v5  ;;  %v94_v21 = vsub.f32 1.0, %v93_v20  ;;  %179 = vmatpush.msra.mxu1 %v152_v38 }
  0x18   :  { %76 = vmatpush.msra.mxu0 %v47_v6  ;;  %v95_v22 = vmul.f32 %v1356_v19, %v94_v21 }
  0x1a   :  { %77 = vmatpush.msra.mxu0 %v46_v7  ;;  %v96_v23 = vadd.f32 %v1356_v19, %v95_v22  ;;  %v1558_v22 = vld [vmem:[#allocation4 + $0x60] sm:$0xff] }
  0x1b   :  { %1263 = vmatmul.msk.f32.vlgmr.msra.gmra.mxu0 %vm55_vm0, %v43_v8  ;;  %v1350_v8 = vld [vmem:[#allocation4 + $0xa0] ss:$0 sm:$0xff] }
  0x1c   :  { %v1500_v24 = vsel %vm97_vm2, %v1356_v19, %v96_v23 }
  0x23   :  { %1264 = vmatmul.msk.f32.gmra.mxu0 %vm55_vm0, %v44_v9 }
  0x98   :  { %v79_v12 = vpop.f32.mrf.mxu0 }
  0x99   :  { %v80_v13 = vadd.f32 %v79_v12, %v54_v11 }
  0x9b   :  { %v86_v14 = vsel %vm85_vm1, %v80_v13, 0.0 }
  0x9c   :  { %87 = vadd.xlane.f32.xlu0 %v86_v14 }
  0xa0   :  { %v82_v15 = vpop.f32.mrf.mxu0 }
  0xa1   :  { %v83_v16 = vadd.f32 %v82_v15, %v54_v11 }
  0xa3   :  { %v89_v17 = vsel %vm85_vm1, %v83_v16, 0.0 }
  0xa4   :  { %90 = vadd.xlane.f32.xlu0 %v89_v17 }
 0x10f   :  { %v88_v25 = vpop.xlane.xlu0 %87 }
 0x110   :  { %v99_v26 = vmul.f32 %v1500_v24, %v88_v25 }
 0x112   :  { %v101_v27 = vsub.f32 %v80_v13, %v99_v26 }
 0x114   :  { %v103_v28 = vmul.f32 %v101_v27, %v101_v27 }
 0x116   :  { %v105_v29 = vsel %vm85_vm1, %v103_v28, 0.0 }
 0x117   :  { %106 = vadd.xlane.f32.xlu1 %v105_v29  ;;  %v91_v30 = vpop.xlane.xlu0 %90 }
 0x118   :  { %v100_v31 = vmul.f32 %v1500_v24, %v91_v30 }
 0x11a   :  { %v102_v32 = vsub.f32 %v83_v16, %v100_v31  ;;  %v1566_v31 = vld [vmem:[#allocation4 + $0x70] sm:$0xff] }
 0x11c   :  { %v104_v33 = vmul.f32 %v102_v32, %v102_v32 }
 0x11e   :  { %v108_v34 = vsel %vm85_vm1, %v104_v33, 0.0 }
 0x11f   :  { %109 = vadd.xlane.f32.xlu1 %v108_v34 }
 0x18a   :  { %v107_v39 = vpop.xlane.xlu1 %106 }
 0x18b   :  { %v111_v40 = vmul.f32 %v107_v39, %v1500_v24 }
 0x18d   :  { %v113_v41 = vadd.f32 1e-05, %v111_v40 }
 0x18f   :  { %1357 = vrsqrt.f32 %v113_v41  ;;  %vm121_vm4 = vweird.f32 %v113_v41 }
 0x192   :  { %v110_v42 = vpop.xlane.xlu1 %109 }
 0x193   :  { %v112_v43 = vmul.f32 %v110_v42, %v1500_v24 }
 0x195   :  { %v1358_v44 = vpop.eup %1357  ;;  %v114_v45 = vadd.f32 1e-05, %v112_v43 }
 0x196   :  { %v116_v46 = vmul.f32 %v1358_v44, %v113_v41  ;;  %vm122_vm3 = vweird.f32 %v1358_v44 }
 0x197   :  { %1359 = vrsqrt.f32 %v114_v45  ;;  %vm123_vm5 = vmor %vm121_vm4, %vm122_vm3  ;;  %vm131_vm7 = vweird.f32 %v114_v45 }
 0x198   :  { %v117_v47 = vmul.f32 %v1358_v44, %v116_v46 }
 0x19a   :  { %v118_v48 = vmul.f32 0.5, %v117_v47 }
 0x19c   :  { %v119_v49 = vsub.f32 1.5, %v118_v48 }
 0x19d   :  { %v1360_v50 = vpop.eup %1359 }
 0x19e   :  { %v120_v51 = vmul.f32 %v1358_v44, %v119_v49  ;;  %v126_v52 = vmul.f32 %v1360_v50, %v114_v45  ;;  %vm132_vm6 = vweird.f32 %v1360_v50 }
 0x19f   :  { %vm133_vm8 = vmor %vm131_vm7, %vm132_vm6 }
 0x1a0   :  { %v124_v54 = vsel %vm123_vm5, %v1358_v44, %v120_v51  ;;  %v127_v55 = vmul.f32 %v1360_v50, %v126_v52 }
 0x1a1   :  { %v135_v57 = vmul.f32 %v124_v54, %v101_v27  ;;  %v1562_v27 = vld [vmem:[#allocation4 + $0x68] sm:$0xff] }
 0x1a2   :  { %v128_v58 = vmul.f32 0.5, %v127_v55 }
 0x1a3   :  { %v138_v59 = vmul.f32 %v137_v53, %v135_v57 }
 0x1a4   :  { %v129_v60 = vsub.f32 1.5, %v128_v58 }
 0x1a5   :  { %v1512_v62 = vadd.f32 %v140_v56, %v138_v59 }
 0x1a6   :  { %v130_v63 = vmul.f32 %v1360_v50, %v129_v60 }
 0x1a7   :  { %v1516_v0 = vadd.f32 %v1510_v61, %v1512_v62 }
 0x1a8   :  { %v134_v1 = vsel %vm133_vm8, %v1360_v50, %v130_v63 }
 0x1a9   :  { %v136_v2 = vmul.f32 %v134_v1, %v102_v32  ;;  %1265 = vmatmul.msk.f32.vlgmr.msra.gmra.mxu1 %vm85_vm1, %v1516_v0 }
 0x1ab   :  { %v139_v3 = vmul.f32 %v137_v53, %v136_v2 }
 0x1ad   :  { %v1522_v5 = vadd.f32 %v140_v56, %v139_v3 }
 0x1af   :  { %v1526_v6 = vadd.f32 %v1520_v4, %v1522_v5 }
 0x1b1   :  { %1266 = vmatmul.msk.f32.gmra.mxu1 %vm85_vm1, %v1526_v6 }
 0x226   :  { %v181_v7 = vpop.f32.mrf.mxu1 }
 0x227   :  { %v1534_v11 = vadd.f32 %v1350_v8, %v181_v7 }
 0x22e   :  { %v184_v9 = vpop.f32.mrf.mxu1 }
 0x22f   :  { %v1530_v10 = vadd.f32 %v1350_v8, %v184_v9 }
 0x231   :  { %191 = vrot.lane.b32.xlu2 %v1530_v10, %s1470_s0  ;;  %v1335_v59 = vpack.i.bf16 %v1534_v11, %v1530_v10 }
 0x239   :  { %189 = vrot.lane.b32.xlu2 %v1534_v11, %s1470_s0 }
 0x241   :  { %195 = vrot.lane.b32.xlu2 %v1530_v10, %s1471_s1 }
 0x249   :  { %193 = vrot.lane.b32.xlu2 %v1534_v11, %s1471_s1 }
 0x28b   :  { %v192_v12 = vpop.permute.xlu2 %191 }
 0x28c   :  { %199 = vrot.lane.b32.xlu0 %v192_v12, %s1471_s1 }
 0x293   :  { %v190_v13 = vpop.permute.xlu2 %189 }
 0x294   :  { %197 = vrot.lane.b32.xlu1 %v190_v13, %s1471_s1  ;;  %v1330_v35 = vpack.i.bf16 %v190_v13, %v192_v12 }
 0x29b   :  { %v196_v15 = vpop.permute.xlu2 %195 }
 0x2a3   :  { %v194_v17 = vpop.permute.xlu2 %193 }
 0x2fe   :  { %v200_v14 = vpop.permute.xlu0 %199 }
 0x2ff   :  { %1267 = vmatpush.xpose.msk.msra.mxu2 %vm201_vm9, %v200_v14 }
 0x306   :  { %v198_v16 = vpop.permute.xlu1 %197 }
 0x307   :  { %1268 = vmatpush.xpose.msk.msra.mxu2 %vm201_vm9, %v198_v16 }
 0x30b   :  { %1269 = vmatpush.xpose.msk.msra.mxu2 %vm201_vm9, %v196_v15 }
 0x30f   :  { %1270 = vmatpush.xpose.msk.msra.mxu2 %vm201_vm9, %v194_v17 }
 0x312   :  { %1271 = vmatmul.msk.f32.vlgmr.msra.gmra.mxu2 %vm201_vm9, %v1534_v11 }
 0x31a   :  { %1272 = vmatmul.msk.f32.gmra.mxu2 %vm201_vm9, %v1530_v10 }
 0x322   :  { %1273 = vmatmul.msk.f32.gmra.mxu2 %vm201_vm9, %v190_v13 }
 0x32a   :  { %1274 = vmatmul.msk.f32.gmra.mxu2 %vm201_vm9, %v192_v12 }
 0x395   :  { %v235_v19 = vpop.f32.mrf.mxu2 }
 0x396   :  { %v236_v20 = vadd.f32 %v235_v19, %v1554_v18 }
 0x398   :  { %v247_v21 = vsel %vm85_vm1, %v236_v20, -inf }
 0x399   :  { %248 = vmax.xlane.f32.xlu2 %v247_v21 }
 0x39d   :  { %v238_v23 = vpop.f32.mrf.mxu2 }
 0x39e   :  { %v239_v25 = vadd.f32 %v238_v23, %v1558_v22 }
 0x3a0   :  { %v250_v26 = vsel %vm85_vm1, %v239_v25, -inf }
 0x3a1   :  { %251 = vmax.xlane.f32.xlu0 %v250_v26 }
 0x3a5   :  { %v241_v28 = vpop.f32.mrf.mxu2 }
 0x3a6   :  { %v242_v29 = vadd.f32 %v241_v28, %v1562_v27 }
 0x3a8   :  { %v253_v30 = vsel %vm85_vm1, %v242_v29, -inf }
 0x3a9   :  { %254 = vmax.xlane.f32.xlu1 %v253_v30 }
 0x3ad   :  { %v244_v32 = vpop.f32.mrf.mxu2 }
 0x3ae   :  { %v245_v33 = vadd.f32 %v244_v32, %v1566_v31 }
 0x3b0   :  { %v256_v34 = vsel %vm85_vm1, %v245_v33, -inf }
 0x3b1   :  { %257 = vmax.xlane.f32.xlu2 %v256_v34 }
 0x3c2   :  { %1331 = vrot.lane.b32.xlu1 %v1330_v35, %s1472_s21 }
 0x40c   :  { %v249_v36 = vpop.xlane.xlu2 %248 }
 0x40d   :  { %v259_v37 = vsub.f32 %v236_v20, %v249_v36 }
 0x40f   :  { %v263_v38 = vmul.f32 1.442695, %v259_v37 }
 0x411   :  { %1361 = vpow2.f32 %v263_v38 }
 0x414   :  { %v252_v39 = vpop.xlane.xlu0 %251 }
 0x415   :  { %v260_v40 = vsub.f32 %v239_v25, %v252_v39 }
 0x417   :  { %v1362_v41 = vpop.eup %1361  ;;  %v265_v42 = vmul.f32 1.442695, %v260_v40 }
 0x418   :  { %v271_v43 = vsel %vm85_vm1, %v1362_v41, 0.0 }
 0x419   :  { %1363 = vpow2.f32 %v265_v42  ;;  %272 = vadd.xlane.f32.xlu0 %v271_v43 }
 0x41c   :  { %v255_v44 = vpop.xlane.xlu1 %254 }
 0x41d   :  { %v261_v45 = vsub.f32 %v242_v29, %v255_v44 }
 0x41f   :  { %v1572_v46 = vpop.eup %1363  ;;  %v267_v47 = vmul.f32 1.442695, %v261_v45 }
 0x420   :  { %v274_v48 = vsel %vm85_vm1, %v1572_v46, 0.0 }
 0x421   :  { %1365 = vpow2.f32 %v267_v47  ;;  %275 = vadd.xlane.f32.xlu2 %v274_v48 }
 0x424   :  { %v258_v49 = vpop.xlane.xlu2 %257 }
 0x425   :  { %v262_v50 = vsub.f32 %v245_v33, %v258_v49 }
 0x427   :  { %v1576_v51 = vpop.eup %1365  ;;  %v269_v52 = vmul.f32 1.442695, %v262_v50 }
 0x428   :  { %v277_v53 = vsel %vm85_vm1, %v1576_v51, 0.0 }
 0x429   :  { %1367 = vpow2.f32 %v269_v52  ;;  %278 = vadd.xlane.f32.xlu0 %v277_v53 }
 0x42f   :  { %v1580_v54 = vpop.eup %1367 }
 0x430   :  { %v280_v55 = vsel %vm85_vm1, %v1580_v54, 0.0 }
 0x431   :  { %281 = vadd.xlane.f32.xlu0 %v280_v55 }
 0x434   :  { %v1332_v56 = vpop.permute.xlu1 %1331 }
 0x435   :  { %v1333_v57 = vunpack.i.l.bf16 %v1332_v56  ;;  %v1334_v58 = vunpack.i.h.bf16 %v1332_v56 }
 0x437   :  { %383 = vmatpush.msra.mxu3 %v1333_v57 }
 0x439   :  { %384 = vmatpush.msra.mxu3 %v1334_v58  ;;  %1336 = vrot.lane.b32.xlu2 %v1335_v59, %s1472_s21 }
 0x48c   :  { %v273_v60 = vpop.xlane.xlu0 %272 }
 0x48d   :  { %1369 = vrcp.f32 %v273_v60  ;;  %v294_v8 = vand.u32 2147483648, %v273_v60  ;;  %v292_v9 = vand.u32 2147483647, %v273_v60  ;;  %vm288_vm11 = vweird.f32 %v273_v60 }
 0x48f   :  { %v295_v14 = vor.u32 1.1754944e-38, %v294_v8  ;;  %vm293_vm13 = vcmp.eq.f32.partialorder %v292_v9, 8.507059e+37  ;;  %v410_v8 = vld [vmem:[#allocation4 + $0xa8] sm:$0xff] }
 0x493   :  { %v1370_v63 = vpop.eup %1369 }
 0x494   :  { %v284_v1 = vmul.f32 %v1370_v63, %v273_v60  ;;  %v276_v2 = vpop.xlane.xlu2 %275  ;;  %vm289_vm10 = vweird.f32 %v1370_v63  ;;  %v413_v60 = vld [vmem:[#allocation4 + $0xc0] sm:$0xff] }
 0x495   :  { %1371 = vrcp.f32 %v276_v2  ;;  %vm290_vm12 = vmor %vm288_vm11, %vm289_vm10  ;;  %v309_v21 = vand.u32 2147483648, %v276_v2  ;;  %v307_v28 = vand.u32 2147483647, %v276_v2  ;;  %vm303_vm15 = vweird.f32 %v276_v2  ;;  %433 = vmatpush.msrb.mxu1 %v413_v60 }
 0x496   :  { %v285_v3 = vsub.f32 1.0, %v284_v1  ;;  %v411_v1 = vld [vmem:[#allocation4 + $0xb0] sm:$0xff] }
 0x497   :  { %v310_v32 = vor.u32 1.1754944e-38, %v309_v21  ;;  %vm308_vm2 = vcmp.eq.f32.partialorder %v307_v28, 8.507059e+37 }
 0x498   :  { %v286_v7 = vmul.f32 %v1370_v63, %v285_v3 }
 0x49a   :  { %v287_v12 = vadd.f32 %v1370_v63, %v286_v7 }
 0x49b   :  { %v1372_v13 = vpop.eup %1371 }
 0x49c   :  { %v299_v10 = vmul.f32 %v1372_v13, %v276_v2  ;;  %v279_v11 = vpop.xlane.xlu0 %278  ;;  %v1337_v15 = vpop.permute.xlu2 %1336  ;;  %v291_v16 = vsel %vm290_vm12, %v1370_v63, %v287_v12  ;;  %vm304_vm14 = vweird.f32 %v1372_v13  ;;  %v412_v63 = vld [vmem:[#allocation4 + $0xb8] sm:$0xff] }
 0x49d   :  { %1373 = vrcp.f32 %v279_v11  ;;  %v1338_v17 = vunpack.i.l.bf16 %v1337_v15  ;;  %v296_v20 = vsel %vm293_vm13, %v295_v14, %v291_v16  ;;  %v1339_v23 = vunpack.i.h.bf16 %v1337_v15  ;;  %vm305_vm0 = vmor %vm303_vm15, %vm304_vm14  ;;  %434 = vmatpush.msrb.mxu1 %v412_v63  ;;  %v1600_v14 = vld [vmem:[#allocation4 + $0xc8] sm:$0x3f]  ;;  %v540_v63 = vld [vmem:[#allocation4 + $0x130] sm:$0xff] }
 0x49e   :  { %v300_v19 = vsub.f32 1.0, %v299_v10  ;;  %v343_v26 = vmul.f32 %v1362_v41, %v296_v20  ;;  %v324_v38 = vand.u32 2147483648, %v279_v11  ;;  %v322_v41 = vand.u32 2147483647, %v279_v11 }
 0x49f   :  { %385 = vmatpush.msra.mxu3 %v1338_v17  ;;  %vm318_vm4 = vweird.f32 %v279_v11  ;;  %435 = vmatpush.msrb.mxu1 %v411_v1  ;;  %v414_v10 = vperm.slane %v1600_v14, 0 }
 0x4a0   :  { %v301_v25 = vmul.f32 %v1372_v13, %v300_v19  ;;  %v325_v44 = vor.u32 1.1754944e-38, %v324_v38  ;;  %vm323_vm6 = vcmp.eq.f32.partialorder %v322_v41, 8.507059e+37  ;;  %v496_v38 = vld [vmem:[#allocation4 + $0xd0] sm:$0xff] }
 0x4a1   :  { %386 = vmatpush.msra.mxu3 %v1339_v23  ;;  %436 = vmatpush.msrb.mxu1 %v410_v8 }
 0x4a2   :  { %1275 = vmatmul.msk.f32.vlgmr.msra.gmra.mxu3 %vm85_vm1, %v343_v26  ;;  %v302_v29 = vadd.f32 %v1372_v13, %v301_v25 }
 0x4a3   :  { %v1374_v30 = vpop.eup %1373 }
 0x4a4   :  { %v314_v33 = vmul.f32 %v1374_v30, %v279_v11  ;;  %v282_v34 = vpop.xlane.xlu0 %281  ;;  %v306_v35 = vsel %vm305_vm0, %v1372_v13, %v302_v29  ;;  %vm319_vm3 = vweird.f32 %v1374_v30 }
 0x4a5   :  { %1375 = vrcp.f32 %v282_v34  ;;  %v311_v36 = vsel %vm308_vm2, %v310_v32, %v306_v35  ;;  %vm320_vm5 = vmor %vm318_vm4, %vm319_vm3  ;;  %v339_v50 = vand.u32 2147483648, %v282_v34  ;;  %vm333_vm8 = vweird.f32 %v282_v34  ;;  %v499_v35 = vld [vmem:[#allocation4 + $0xe8] sm:$0xff] }
 0x4a6   :  { %v315_v37 = vsub.f32 1.0, %v314_v33  ;;  %v344_v40 = vmul.f32 %v1572_v46, %v311_v36  ;;  %v337_v46 = vand.u32 2147483647, %v282_v34  ;;  %520 = vmatpush.msrb.mxu0 %v499_v35  ;;  %v498_v36 = vld [vmem:[#allocation4 + $0xe0] sm:$0xff] }
 0x4a7   :  { %v340_v56 = vor.u32 1.1754944e-38, %v339_v50 }
 0x4a8   :  { %v316_v39 = vmul.f32 %v1374_v30, %v315_v37  ;;  %vm338_vm11 = vcmp.eq.f32.partialorder %v337_v46, 8.507059e+37  ;;  %521 = vmatpush.msrb.mxu0 %v498_v36  ;;  %v497_v37 = vld [vmem:[#allocation4 + $0xd8] sm:$0xff]  ;;  %v543_v46 = vld [vmem:[#allocation4 + $0x148] sm:$0xff] }
 0x4aa   :  { %1276 = vmatmul.msk.f32.gmra.mxu3 %vm85_vm1, %v344_v40  ;;  %v317_v42 = vadd.f32 %v1374_v30, %v316_v39  ;;  %522 = vmatpush.msrb.mxu0 %v497_v37 }
 0x4ab   :  { %v1376_v43 = vpop.eup %1375 }
 0x4ac   :  { %v329_v45 = vmul.f32 %v1376_v43, %v282_v34  ;;  %v321_v47 = vsel %vm320_vm5, %v1374_v30, %v317_v42  ;;  %vm334_vm7 = vweird.f32 %v1376_v43  ;;  %523 = vmatpush.msrb.mxu0 %v496_v38  ;;  %v548_v42 = vld [vmem:[#allocation4 + $0x170] sm:$0xff] }
 0x4ad   :  { %v326_v48 = vsel %vm323_vm6, %v325_v44, %v321_v47  ;;  %vm335_vm10 = vmor %vm333_vm8, %vm334_vm7  ;;  %550 = vmatpush.msrb.mxu3 %v548_v42  ;;  %v546_v44 = vld [vmem:[#allocation4 + $0x160] sm:$0xff] }
 0x4ae   :  { %v330_v49 = vsub.f32 1.0, %v329_v45  ;;  %v345_v53 = vmul.f32 %v1576_v51, %v326_v48  ;;  %v545_v48 = vld [vmem:[#allocation4 + $0x158] sm:$0xff] }
 0x4b0   :  { %v331_v52 = vmul.f32 %v1376_v43, %v330_v49 }
 0x4b2   :  { %1277 = vmatmul.msk.f32.gmra.mxu3 %vm85_vm1, %v345_v53  ;;  %v332_v55 = vadd.f32 %v1376_v43, %v331_v52  ;;  %v544_v52 = vld [vmem:[#allocation4 + $0x150] sm:$0xff] }
 0x4b4   :  { %v336_v57 = vsel %vm335_vm10, %v1376_v43, %v332_v55  ;;  %v547_v43 = vld [vmem:[#allocation4 + $0x168] sm:$0xff] }
 0x4b5   :  { %v341_v58 = vsel %vm338_vm11, %v340_v56, %v336_v57  ;;  %551 = vmatpush.msrb.mxu3 %v547_v43  ;;  %v542_v56 = vld [vmem:[#allocation4 + $0x140] sm:$0xff] }
 0x4b6   :  { %v346_v59 = vmul.f32 %v1580_v54, %v341_v58  ;;  %v541_v58 = vld [vmem:[#allocation4 + $0x138] sm:$0xff] }
 0x4b7   :  { %552 = vmatpush.msrb.mxu3 %v546_v44 }
 0x4b9   :  { %553 = vmatpush.msrb.mxu3 %v545_v48 }
 0x4ba   :  { %1278 = vmatmul.msk.f32.gmra.mxu3 %vm85_vm1, %v346_v59 }
 0x4bb   :  { %554 = vmatpush.msrb.mxu3 %v544_v52 }
 0x4bd   :  { %555 = vmatpush.msrb.mxu3 %v543_v46 }
 0x4bf   :  { %556 = vmatpush.msrb.mxu3 %v542_v56 }
 0x4c1   :  { %557 = vmatpush.msrb.mxu3 %v541_v58  ;;  %v632_v58 = vld [vmem:[#allocation4 + $0x188] sm:$0xff] }
 0x4c3   :  { %558 = vmatpush.msrb.mxu3 %v540_v63 }
 0x525   :  { %v388_v51 = vpop.f32.mrf.mxu3 }
 0x52d   :  { %v391_v2 = vpop.f32.mrf.mxu3 }
 0x535   :  { %v394_v3 = vpop.f32.mrf.mxu3 }
 0x536   :  { %402 = vrot.lane.b32.xlu0 %v394_v3, %s1473_s22  ;;  %v539_v3 = vld [vmem:[#allocation4 + $0x128] sm:$0xff] }
 0x537   :  { %559 = vmatpush.msrb.mxu3 %v539_v3 }
 0x53d   :  { %v397_v7 = vpop.f32.mrf.mxu3 }
 0x53e   :  { %404 = vrot.lane.b32.xlu1 %v397_v7, %s1473_s22 }
 0x5a8   :  { %v403_v54 = vpop.permute.xlu0 %402 }
 0x5a9   :  { %v408_v9 = vsel %vm201_vm9, %v388_v51, %v403_v54 }
 0x5aa   :  { %1279 = vmatmul.msk.f32.vlgmr.msrb.gmra.mxu1 %vm85_vm1, %v408_v9  ;;  %v493_v9 = vperm.slane %v1600_v14, 2 }
 0x5b0   :  { %v405_v12 = vpop.permute.xlu1 %404 }
 0x5b1   :  { %v409_v13 = vsel %vm201_vm9, %v391_v2, %v405_v12  ;;  %v490_v2 = vperm.slane %v1600_v14, 1  ;;  %v538_v12 = vld [vmem:[#allocation4 + $0x120] sm:$0xff] }
 0x5b2   :  { %1280 = vmatmul.msk.f32.gmra.mxu1 %vm85_vm1, %v409_v13  ;;  %560 = vmatpush.msrb.mxu3 %v538_v12 }
 0x627   :  { %v438_v11 = vpop.f32.mrf.mxu1 }
 0x628   :  { %v439_v15 = vadd.f32 %v438_v11, %v414_v10  ;;  %v537_v11 = vld [vmem:[#allocation4 + $0x118] sm:$0xff] }
 0x629   :  { %561 = vmatpush.msrb.mxu3 %v537_v11 }
 0x62a   :  { %v444_v16 = vadd.f32 %v439_v15, %v1516_v0 }
 0x62c   :  { %v446_v17 = vsel %vm85_vm1, %v444_v16, 0.0 }
 0x62d   :  { %447 = vadd.xlane.f32.xlu2 %v446_v17  ;;  %v536_v17 = vld [vmem:[#allocation4 + $0x110] sm:$0xff] }
 0x62e   :  { %562 = vmatpush.msrb.mxu3 %v536_v17 }
 0x62f   :  { %v441_v19 = vpop.f32.mrf.mxu1 }
 0x630   :  { %v442_v20 = vadd.f32 %v441_v19, %v414_v10 }
 0x632   :  { %v445_v21 = vadd.f32 %v442_v20, %v1526_v6 }
 0x634   :  { %v449_v23 = vsel %vm85_vm1, %v445_v21, 0.0 }
 0x635   :  { %450 = vadd.xlane.f32.xlu1 %v449_v23 }
 0x6a0   :  { %v448_v25 = vpop.xlane.xlu2 %447 }
 0x6a1   :  { %v452_v26 = vmul.f32 %v448_v25, %v1500_v24 }
 0x6a3   :  { %v454_v28 = vsub.f32 %v444_v16, %v452_v26  ;;  %v535_v26 = vld [vmem:[#allocation4 + $0x108] sm:$0xff] }
 0x6a4   :  { %563 = vmatpush.msrb.mxu3 %v535_v26 }
 0x6a5   :  { %v456_v29 = vmul.f32 %v454_v28, %v454_v28 }
 0x6a7   :  { %v458_v30 = vsel %vm85_vm1, %v456_v29, 0.0  ;;  %v533_v29 = vld [vmem:[#allocation4 + $0xf8] sm:$0xff] }
 0x6a8   :  { %459 = vadd.xlane.f32.xlu0 %v458_v30  ;;  %v451_v32 = vpop.xlane.xlu1 %450  ;;  %v1351_v30 = vld [vmem:[#allocation4 + $0xf0] ss:$0 sm:$0xff] }
 0x6a9   :  { %v453_v0 = vmul.f32 %v451_v32, %v1500_v24 }
 0x6ab   :  { %v1610_v33 = vsub.f32 %v445_v21, %v453_v0 }
 0x6ad   :  { %v457_v34 = vmul.f32 %v1610_v33, %v1610_v33 }
 0x6af   :  { %v461_v6 = vsel %vm85_vm1, %v457_v34, 0.0 }
 0x6b0   :  { %462 = vadd.xlane.f32.xlu2 %v461_v6 }
 0x71b   :  { %v460_v39 = vpop.xlane.xlu0 %459 }
 0x71c   :  { %v464_v40 = vmul.f32 %v460_v39, %v1500_v24 }
 0x71e   :  { %v466_v41 = vadd.f32 1e-05, %v464_v40 }
 0x720   :  { %1377 = vrsqrt.f32 %v466_v41  ;;  %vm474_vm13 = vweird.f32 %v466_v41 }
 0x723   :  { %v463_v45 = vpop.xlane.xlu2 %462 }
 0x724   :  { %v465_v47 = vmul.f32 %v463_v45, %v1500_v24 }
 0x726   :  { %v1378_v49 = vpop.eup %1377  ;;  %v467_v50 = vadd.f32 1e-05, %v465_v47 }
 0x727   :  { %v469_v53 = vmul.f32 %v1378_v49, %v466_v41  ;;  %vm475_vm12 = vweird.f32 %v1378_v49 }
 0x728   :  { %1379 = vrsqrt.f32 %v467_v50  ;;  %vm476_vm14 = vmor %vm474_vm13, %vm475_vm12  ;;  %vm484_vm0 = vweird.f32 %v467_v50 }
 0x729   :  { %v470_v55 = vmul.f32 %v1378_v49, %v469_v53 }
 0x72b   :  { %v471_v57 = vmul.f32 0.5, %v470_v55 }
 0x72d   :  { %v472_v59 = vsub.f32 1.5, %v471_v57  ;;  %v633_v57 = vld [vmem:[#allocation4 + $0x190] sm:$0xff] }
 0x72e   :  { %v1380_v60 = vpop.eup %1379  ;;  %654 = vmatpush.msra.mxu1 %v633_v57 }
 0x72f   :  { %v473_v1 = vmul.f32 %v1378_v49, %v472_v59  ;;  %v479_v51 = vmul.f32 %v1380_v60, %v467_v50  ;;  %vm485_vm15 = vweird.f32 %v1380_v60  ;;  %v631_v59 = vld [vmem:[#allocation4 + $0x180] sm:$0xff] }
 0x730   :  { %vm486_vm2 = vmor %vm484_vm0, %vm485_vm15  ;;  %655 = vmatpush.msra.mxu1 %v632_v58 }
 0x731   :  { %v477_v7 = vsel %vm476_vm14, %v1378_v49, %v473_v1  ;;  %v480_v8 = vmul.f32 %v1380_v60, %v479_v51 }
 0x732   :  { %v488_v54 = vmul.f32 %v477_v7, %v454_v28  ;;  %v534_v28 = vld [vmem:[#allocation4 + $0x100] sm:$0xff]  ;;  %656 = vmatpush.msra.mxu1 %v631_v59 }
 0x733   :  { %v481_v13 = vmul.f32 0.5, %v480_v8  ;;  %564 = vmatpush.msrb.mxu3 %v534_v28 }
 0x734   :  { %v491_v10 = vmul.f32 %v490_v2, %v488_v54 }
 0x735   :  { %v482_v15 = vsub.f32 1.5, %v481_v13  ;;  %565 = vmatpush.msrb.mxu3 %v533_v29 }
 0x736   :  { %v494_v16 = vadd.f32 %v493_v9, %v491_v10 }
 0x737   :  { %v483_v19 = vmul.f32 %v1380_v60, %v482_v15 }
 0x738   :  { %1281 = vmatmul.msk.f32.vlgmr.msrb.gmra.mxu0 %vm85_vm1, %v494_v16 }
 0x739   :  { %v487_v20 = vsel %vm486_vm2, %v1380_v60, %v483_v19  ;;  %v630_v60 = vld [vmem:[#allocation4 + $0x178] sm:$0xff] }
 0x73a   :  { %v489_v21 = vmul.f32 %v487_v20, %v1610_v33  ;;  %v549_v33 = vperm.slane %v1600_v14, 3  ;;  %657 = vmatpush.msra.mxu1 %v630_v60  ;;  %v622_v20 = vperm.slane %v1600_v14, 5 }
 0x73c   :  { %v492_v23 = vmul.f32 %v490_v2, %v489_v21 }
 0x73e   :  { %v495_v25 = vadd.f32 %v493_v9, %v492_v23 }
 0x740   :  { %1282 = vmatmul.msk.f32.gmra.mxu0 %vm85_vm1, %v495_v25 }
 0x7b5   :  { %v525_v32 = vpop.f32.mrf.mxu0 }
 0x7b6   :  { %v526_v0 = vadd.f32 %v1351_v30, %v525_v32 }
 0x7b8   :  { %v531_v34 = vmax.f32 %v526_v0, 0.0 }
 0x7ba   :  { %566 = vmatmul.f32.vlgmr.msrb.gmra.mxu3 %v531_v34 }
 0x7bd   :  { %v528_v6 = vpop.f32.mrf.mxu0 }
 0x7be   :  { %v529_v35 = vadd.f32 %v1351_v30, %v528_v6 }
 0x7c0   :  { %v532_v36 = vmax.f32 %v529_v35, 0.0 }
 0x7c2   :  { %569 = vmatmul.f32.gmra.mxu3 %v532_v36 }
 0x83d   :  { %v567_v37 = vpop.f32.mrf.mxu3 }
 0x83e   :  { %v568_v38 = vadd.f32 %v567_v37, %v549_v33 }
 0x840   :  { %v573_v39 = vadd.f32 %v568_v38, %v494_v16  ;;  %v619_v16 = vperm.slane %v1600_v14, 4 }
 0x842   :  { %v575_v40 = vsel %vm85_vm1, %v573_v39, 0.0 }
 0x843   :  { %576 = vadd.xlane.f32.xlu1 %v575_v40 }
 0x845   :  { %v570_v41 = vpop.f32.mrf.mxu3 }
 0x846   :  { %v571_v42 = vadd.f32 %v570_v41, %v549_v33 }
 0x848   :  { %v574_v43 = vadd.f32 %v571_v42, %v495_v25 }
 0x84a   :  { %v578_v44 = vsel %vm85_vm1, %v574_v43, 0.0 }
 0x84b   :  { %579 = vadd.xlane.f32.xlu2 %v578_v44 }
 0x8b6   :  { %v577_v45 = vpop.xlane.xlu1 %576 }
 0x8b7   :  { %v581_v47 = vmul.f32 %v577_v45, %v1500_v24 }
 0x8b9   :  { %v583_v48 = vsub.f32 %v573_v39, %v581_v47 }
 0x8bb   :  { %v585_v49 = vmul.f32 %v583_v48, %v583_v48 }
 0x8bd   :  { %v587_v50 = vsel %vm85_vm1, %v585_v49, 0.0 }
 0x8be   :  { %v580_v52 = vpop.xlane.xlu2 %579  ;;  %588 = vadd.xlane.f32.xlu0 %v587_v50 }
 0x8bf   :  { %v582_v53 = vmul.f32 %v580_v52, %v1500_v24 }
 0x8c1   :  { %v584_v46 = vsub.f32 %v574_v43, %v582_v53 }
 0x8c3   :  { %v586_v55 = vmul.f32 %v584_v46, %v584_v46 }
 0x8c5   :  { %v590_v56 = vsel %vm85_vm1, %v586_v55, 0.0 }
 0x8c6   :  { %591 = vadd.xlane.f32.xlu1 %v590_v56 }
 0x931   :  { %v589_v63 = vpop.xlane.xlu0 %588 }
 0x932   :  { %v593_v1 = vmul.f32 %v589_v63, %v1500_v24 }
 0x934   :  { %v595_v51 = vadd.f32 1e-05, %v593_v1 }
 0x936   :  { %1381 = vrsqrt.f32 %v595_v51  ;;  %vm603_vm4 = vweird.f32 %v595_v51 }
 0x939   :  { %v592_v2 = vpop.xlane.xlu1 %591 }
 0x93a   :  { %v594_v3 = vmul.f32 %v592_v2, %v1500_v24 }
 0x93c   :  { %v1382_v7 = vpop.eup %1381  ;;  %v596_v8 = vadd.f32 1e-05, %v594_v3 }
 0x93d   :  { %v598_v54 = vmul.f32 %v1382_v7, %v595_v51  ;;  %vm604_vm3 = vweird.f32 %v1382_v7 }
 0x93e   :  { %1383 = vrsqrt.f32 %v596_v8  ;;  %vm605_vm5 = vmor %vm603_vm4, %vm604_vm3  ;;  %vm613_vm7 = vweird.f32 %v596_v8 }
 0x93f   :  { %v599_v9 = vmul.f32 %v1382_v7, %v598_v54 }
 0x941   :  { %v600_v12 = vmul.f32 0.5, %v599_v9 }
 0x943   :  { %v601_v13 = vsub.f32 1.5, %v600_v12 }
 0x944   :  { %v1384_v10 = vpop.eup %1383 }
 0x945   :  { %v602_v11 = vmul.f32 %v1382_v7, %v601_v13  ;;  %v608_v15 = vmul.f32 %v1384_v10, %v596_v8  ;;  %vm614_vm6 = vweird.f32 %v1384_v10 }
 0x946   :  { %vm615_vm8 = vmor %vm613_vm7, %vm614_vm6 }
 0x947   :  { %v606_v17 = vsel %vm605_vm5, %v1382_v7, %v602_v11  ;;  %v609_v19 = vmul.f32 %v1384_v10, %v608_v15 }
 0x948   :  { %v617_v21 = vmul.f32 %v606_v17, %v583_v48 }
 0x949   :  { %v610_v23 = vmul.f32 0.5, %v609_v19 }
 0x94a   :  { %v620_v25 = vmul.f32 %v619_v16, %v617_v21 }
 0x94b   :  { %v611_v26 = vsub.f32 1.5, %v610_v23 }
 0x94c   :  { %v623_v28 = vadd.f32 %v622_v20, %v620_v25 }
 0x94d   :  { %v612_v29 = vmul.f32 %v1384_v10, %v611_v26 }
 0x94e   :  { %v1634_v30 = vadd.f32 %v623_v28, %v1512_v62  ;;  %v1352_v62 = vld [vmem:[#allocation4 + $0x198] ss:$0 sm:$0xff] }
 0x94f   :  { %v616_v32 = vsel %vm615_vm8, %v1384_v10, %v612_v29 }
 0x950   :  { %v618_v0 = vmul.f32 %v616_v32, %v584_v46  ;;  %v1638_v34 = vadd.f32 %v1634_v30, %v1510_v61 }
 0x952   :  { %1283 = vmatmul.msk.f32.vlgmr.msra.gmra.mxu1 %vm85_vm1, %v1638_v34  ;;  %v621_v14 = vmul.f32 %v619_v16, %v618_v0 }
 0x954   :  { %v624_v6 = vadd.f32 %v622_v20, %v621_v14 }
 0x956   :  { %v1643_v35 = vadd.f32 %v624_v6, %v1522_v5 }
 0x958   :  { %v1647_v36 = vadd.f32 %v1643_v35, %v1520_v4 }
 0x95a   :  { %1284 = vmatmul.msk.f32.gmra.mxu1 %vm85_vm1, %v1647_v36 }
 0x9cf   :  { %v659_v33 = vpop.f32.mrf.mxu1 }
 0x9d0   :  { %v1651_v37 = vadd.f32 %v1352_v62, %v659_v33 }
 0x9d2   :  { %667 = vrot.lane.b32.xlu0 %v1651_v37, %s1470_s0 }
 0x9d7   :  { %v662_v61 = vpop.f32.mrf.mxu1 }
 0x9d8   :  { %v1655_v38 = vadd.f32 %v1352_v62, %v662_v61 }
 0x9da   :  { %669 = vrot.lane.b32.xlu2 %v1655_v38, %s1470_s0  ;;  %v1345_v16 = vpack.i.bf16 %v1651_v37, %v1655_v38 }
 0x9e2   :  { %673 = vrot.lane.b32.xlu2 %v1655_v38, %s1471_s1 }
 0xa34   :  { %v670_v4 = vpop.permute.xlu2 %669 }
 0xa35   :  { %677 = vrot.lane.b32.xlu1 %v670_v4, %s1471_s1 }
 0xa3c   :  { %v674_v41 = vpop.permute.xlu2 %673 }
 0xa3d   :  { %671 = vrot.lane.b32.xlu1 %v1651_v37, %s1471_s1 }
 0xa44   :  { %v668_v5 = vpop.permute.xlu0 %667 }
 0xa45   :  { %675 = vrot.lane.b32.xlu0 %v668_v5, %s1471_s1  ;;  %v1340_v56 = vpack.i.bf16 %v668_v5, %v670_v4 }
 0xaa7   :  { %v678_v39 = vpop.permute.xlu1 %677 }
 0xaa8   :  { %1285 = vmatpush.xpose.msk.msra.mxu0 %vm201_vm9, %v678_v39 }
 0xaaf   :  { %v672_v42 = vpop.permute.xlu1 %671 }
 0xab7   :  { %v676_v40 = vpop.permute.xlu0 %675 }
 0xab8   :  { %1286 = vmatpush.xpose.msk.msra.mxu0 %vm201_vm9, %v676_v40 }
 0xabc   :  { %1287 = vmatpush.xpose.msk.msra.mxu0 %vm201_vm9, %v674_v41 }
 0xac0   :  { %1288 = vmatpush.xpose.msk.msra.mxu0 %vm201_vm9, %v672_v42 }
 0xac3   :  { %1289 = vmatmul.msk.f32.vlgmr.msra.gmra.mxu0 %vm201_vm9, %v1651_v37 }
 0xacb   :  { %1290 = vmatmul.msk.f32.gmra.mxu0 %vm201_vm9, %v1655_v38 }
 0xad3   :  { %1291 = vmatmul.msk.f32.gmra.mxu0 %vm201_vm9, %v668_v5 }
 0xadb   :  { %1292 = vmatmul.msk.f32.gmra.mxu0 %vm201_vm9, %v670_v4 }
 0xb40   :  { %v712_v43 = vpop.f32.mrf.mxu0 }
 0xb41   :  { %v713_v44 = vadd.f32 %v712_v43, %v1554_v18 }
 0xb43   :  { %v724_v45 = vsel %vm85_vm1, %v713_v44, -inf }
 0xb44   :  { %725 = vmax.xlane.f32.xlu0 %v724_v45 }
 0xb48   :  { %v715_v47 = vpop.f32.mrf.mxu0 }
 0xb49   :  { %v716_v48 = vadd.f32 %v715_v47, %v1558_v22 }
 0xb4b   :  { %v727_v49 = vsel %vm85_vm1, %v716_v48, -inf }
 0xb4c   :  { %728 = vmax.xlane.f32.xlu2 %v727_v49 }
 0xb50   :  { %v718_v50 = vpop.f32.mrf.mxu0 }
 0xb51   :  { %v719_v52 = vadd.f32 %v718_v50, %v1562_v27 }
 0xb53   :  { %v730_v53 = vsel %vm85_vm1, %v719_v52, -inf }
 0xb54   :  { %731 = vmax.xlane.f32.xlu1 %v730_v53 }
 0xb58   :  { %v721_v46 = vpop.f32.mrf.mxu0 }
 0xb59   :  { %v722_v55 = vadd.f32 %v721_v46, %v1566_v31 }
 0xb5b   :  { %v733_v18 = vsel %vm85_vm1, %v722_v55, -inf }
 0xb5c   :  { %734 = vmax.xlane.f32.xlu0 %v733_v18 }
 0xb70   :  { %1341 = vrot.lane.b32.xlu0 %v1340_v56, %s1472_s21 }
 0xbb7   :  { %v726_v57 = vpop.xlane.xlu0 %725 }
 0xbb8   :  { %v736_v22 = vsub.f32 %v713_v44, %v726_v57 }
 0xbba   :  { %v740_v58 = vmul.f32 1.442695, %v736_v22 }
 0xbbc   :  { %1385 = vpow2.f32 %v740_v58 }
 0xbbf   :  { %v729_v59 = vpop.xlane.xlu2 %728 }
 0xbc0   :  { %v737_v60 = vsub.f32 %v716_v48, %v729_v59 }
 0xbc2   :  { %v1684_v63 = vpop.eup %1385  ;;  %v742_v27 = vmul.f32 1.442695, %v737_v60 }
 0xbc3   :  { %v748_v1 = vsel %vm85_vm1, %v1684_v63, 0.0 }
 0xbc4   :  { %1387 = vpow2.f32 %v742_v27  ;;  %749 = vadd.xlane.f32.xlu2 %v748_v1 }
 0xbc7   :  { %v732_v31 = vpop.xlane.xlu1 %731 }
 0xbc8   :  { %v738_v51 = vsub.f32 %v719_v52, %v732_v31 }
 0xbca   :  { %v1688_v2 = vpop.eup %1387  ;;  %v744_v3 = vmul.f32 1.442695, %v738_v51 }
 0xbcb   :  { %v751_v7 = vsel %vm85_vm1, %v1688_v2, 0.0 }
 0xbcc   :  { %1389 = vpow2.f32 %v744_v3  ;;  %752 = vadd.xlane.f32.xlu1 %v751_v7 }
 0xbcf   :  { %v735_v8 = vpop.xlane.xlu0 %734 }
 0xbd0   :  { %v739_v54 = vsub.f32 %v722_v55, %v735_v8 }
 0xbd2   :  { %v1692_v9 = vpop.eup %1389  ;;  %v746_v12 = vmul.f32 1.442695, %v739_v54 }
 0xbd3   :  { %v754_v13 = vsel %vm85_vm1, %v1692_v9, 0.0 }
 0xbd4   :  { %1391 = vpow2.f32 %v746_v12  ;;  %755 = vadd.xlane.f32.xlu2 %v754_v13  ;;  %v890_v13 = vld [vmem:[#allocation4 + $0x1b8] sm:$0xff] }
 0xbd5   :  { %910 = vmatpush.msrb.mxu1 %v890_v13  ;;  %v1018_v13 = vld [vmem:[#allocation4 + $0x230] sm:$0xff] }
 0xbda   :  { %v1696_v10 = vpop.eup %1391 }
 0xbdb   :  { %v757_v11 = vsel %vm85_vm1, %v1696_v10, 0.0 }
 0xbdc   :  { %758 = vadd.xlane.f32.xlu2 %v757_v11  ;;  %v889_v11 = vld [vmem:[#allocation4 + $0x1b0] sm:$0xff] }
 0xbdd   :  { %911 = vmatpush.msrb.mxu1 %v889_v11 }
 0xbe2   :  { %v1342_v15 = vpop.permute.xlu0 %1341 }
 0xbe3   :  { %v1343_v17 = vunpack.i.l.bf16 %v1342_v15  ;;  %v1344_v19 = vunpack.i.h.bf16 %v1342_v15  ;;  %v888_v15 = vld [vmem:[#allocation4 + $0x1a8] sm:$0xff] }
 0xbe4   :  { %912 = vmatpush.msrb.mxu1 %v888_v15  ;;  %v1017_v15 = vld [vmem:[#allocation4 + $0x228] sm:$0xff] }
 0xbe5   :  { %1346 = vrot.lane.b32.xlu1 %v1345_v16, %s1472_s21  ;;  %860 = vmatpush.msrb.mxu2 %v1343_v17 }
 0xbe7   :  { %861 = vmatpush.msrb.mxu2 %v1344_v19 }
 0xc37   :  { %v750_v20 = vpop.xlane.xlu2 %749 }
 0xc38   :  { %1393 = vrcp.f32 %v750_v20  ;;  %v771_v37 = vand.u32 2147483648, %v750_v20  ;;  %vm765_vm11 = vweird.f32 %v750_v20  ;;  %v769_v61 = vand.u32 2147483647, %v750_v20 }
 0xc3a   :  { %v772_v39 = vor.u32 1.1754944e-38, %v771_v37  ;;  %vm770_vm13 = vcmp.eq.f32.partialorder %v769_v61, 8.507059e+37 }
 0xc3e   :  { %v1394_v23 = vpop.eup %1393 }
 0xc3f   :  { %v753_v21 = vpop.xlane.xlu1 %752  ;;  %v761_v25 = vmul.f32 %v1394_v23, %v750_v20  ;;  %vm766_vm10 = vweird.f32 %v1394_v23  ;;  %v887_v20 = vld [vmem:[#allocation4 + $0x1a0] sm:$0xff] }
 0xc40   :  { %1395 = vrcp.f32 %v753_v21  ;;  %vm767_vm12 = vmor %vm765_vm11, %vm766_vm10  ;;  %v786_v47 = vand.u32 2147483648, %v753_v21  ;;  %vm780_vm15 = vweird.f32 %v753_v21  ;;  %v784_v50 = vand.u32 2147483647, %v753_v21  ;;  %913 = vmatpush.msrb.mxu1 %v887_v20 }
 0xc41   :  { %v762_v28 = vsub.f32 1.0, %v761_v25 }
 0xc42   :  { %v787_v55 = vor.u32 1.1754944e-38, %v786_v47  ;;  %vm785_vm2 = vcmp.eq.f32.partialorder %v784_v50, 8.507059e+37  ;;  %v973_v47 = vld [vmem:[#allocation4 + $0x1c8] sm:$0xff] }
 0xc43   :  { %v763_v32 = vmul.f32 %v1394_v23, %v762_v28 }
 0xc45   :  { %v764_v14 = vadd.f32 %v1394_v23, %v763_v32 }
 0xc46   :  { %v1396_v29 = vpop.eup %1395 }
 0xc47   :  { %v756_v26 = vpop.xlane.xlu2 %755  ;;  %v776_v0 = vmul.f32 %v1396_v29, %v753_v21  ;;  %v768_v5 = vsel %vm767_vm12, %v1394_v23, %v764_v14  ;;  %vm781_vm14 = vweird.f32 %v1396_v29 }
 0xc48   :  { %1397 = vrcp.f32 %v756_v26  ;;  %v773_v42 = vsel %vm770_vm13, %v772_v39, %v768_v5  ;;  %vm782_vm0 = vmor %vm780_vm15, %vm781_vm14  ;;  %v801_v22 = vand.u32 2147483648, %v756_v26  ;;  %vm795_vm4 = vweird.f32 %v756_v26 }
 0xc49   :  { %v777_v6 = vsub.f32 1.0, %v776_v0  ;;  %v820_v49 = vmul.f32 %v1684_v63, %v773_v42  ;;  %v799_v59 = vand.u32 2147483647, %v756_v26 }
 0xc4a   :  { %v802_v27 = vor.u32 1.1754944e-38, %v801_v22 }
 0xc4b   :  { %v778_v38 = vmul.f32 %v1396_v29, %v777_v6  ;;  %vm800_vm6 = vcmp.eq.f32.partialorder %v799_v59, 8.507059e+37 }
 0xc4d   :  { %v779_v44 = vadd.f32 %v1396_v29, %v778_v38 }
 0xc4e   :  { %v1398_v33 = vpop.eup %1397 }
 0xc4f   :  { %v759_v62 = vpop.xlane.xlu2 %758  ;;  %v791_v4 = vmul.f32 %v1398_v33, %v756_v26  ;;  %v783_v46 = vsel %vm782_vm0, %v1396_v29, %v779_v44  ;;  %vm796_vm3 = vweird.f32 %v1398_v33  ;;  %v1717_v26 = vld [vmem:[#allocation4 + $0x1c0] sm:$0x3f]  ;;  %v975_v44 = vld [vmem:[#allocation4 + $0x1d8] sm:$0xff] }
 0xc50   :  { %1399 = vrcp.f32 %v759_v62  ;;  %v788_v18 = vsel %vm785_vm2, %v787_v55, %v783_v46  ;;  %vm797_vm5 = vmor %vm795_vm4, %vm796_vm3  ;;  %v816_v51 = vand.u32 2147483648, %v759_v62  ;;  %vm810_vm8 = vweird.f32 %v759_v62 }
 0xc51   :  { %v792_v43 = vsub.f32 1.0, %v791_v4  ;;  %v821_v58 = vmul.f32 %v1688_v2, %v788_v18  ;;  %v814_v7 = vand.u32 2147483647, %v759_v62  ;;  %v891_v28 = vperm.slane %v1717_v26, 0 }
 0xc52   :  { %v817_v8 = vor.u32 1.1754944e-38, %v816_v51  ;;  %v970_v59 = vperm.slane %v1717_v26, 2 }
 0xc53   :  { %v793_v52 = vmul.f32 %v1398_v33, %v792_v43  ;;  %vm815_vm11 = vcmp.eq.f32.partialorder %v814_v7, 8.507059e+37  ;;  %v976_v43 = vld [vmem:[#allocation4 + $0x1e0] sm:$0xff]  ;;  %v1022_v7 = vld [vmem:[#allocation4 + $0x250] sm:$0xff] }
 0xc54   :  { %997 = vmatpush.msra.mxu3 %v976_v43 }
 0xc55   :  { %v794_v57 = vadd.f32 %v1398_v33, %v793_v52 }
 0xc56   :  { %v1400_v45 = vpop.eup %1399  ;;  %998 = vmatpush.msra.mxu3 %v975_v44 }
 0xc57   :  { %v1347_v40 = vpop.permute.xlu1 %1346  ;;  %v806_v53 = vmul.f32 %v1400_v45, %v759_v62  ;;  %v798_v63 = vsel %vm797_vm5, %v1398_v33, %v794_v57  ;;  %vm811_vm7 = vweird.f32 %v1400_v45  ;;  %v967_v57 = vperm.slane %v1717_v26, 1 }
 0xc58   :  { %v1348_v41 = vunpack.i.l.bf16 %v1347_v40  ;;  %v1349_v48 = vunpack.i.h.bf16 %v1347_v40  ;;  %v803_v1 = vsel %vm800_vm6, %v802_v27, %v798_v63  ;;  %vm812_vm10 = vmor %vm810_vm8, %vm811_vm7  ;;  %v1025_v27 = vld [vmem:[#allocation4 + $0x268] sm:$0xff] }
 0xc59   :  { %v807_v56 = vsub.f32 1.0, %v806_v53  ;;  %v822_v3 = vmul.f32 %v1692_v9, %v803_v1  ;;  %v1024_v1 = vld [vmem:[#allocation4 + $0x260] sm:$0xff]  ;;  %1027 = vmatpush.msrb.mxu0 %v1025_v27 }
 0xc5a   :  { %862 = vmatpush.msrb.mxu2 %v1348_v41 }
 0xc5b   :  { %v808_v60 = vmul.f32 %v1400_v45, %v807_v56  ;;  %1028 = vmatpush.msrb.mxu0 %v1024_v1 }
 0xc5c   :  { %863 = vmatpush.msrb.mxu2 %v1349_v48 }
 0xc5d   :  { %1293 = vmatmul.msk.f32.vlgmr.msrb.gmra.mxu2 %vm85_vm1, %v820_v49  ;;  %v809_v31 = vadd.f32 %v1400_v45, %v808_v60 }
 0xc5e   :  { %1305 = vmatpush.msra.mxu2 %v1025_v27 }
 0xc5f   :  { %v813_v2 = vsel %vm812_vm10, %v1400_v45, %v809_v31  ;;  %v974_v45 = vld [vmem:[#allocation4 + $0x1d0] sm:$0xff]  ;;  %v1023_v31 = vld [vmem:[#allocation4 + $0x258] sm:$0xff] }
 0xc60   :  { %v818_v54 = vsel %vm815_vm11, %v817_v8, %v813_v2  ;;  %999 = vmatpush.msra.mxu3 %v974_v45  ;;  %1306 = vmatpush.msra.mxu2 %v1024_v1  ;;  %v1021_v8 = vld [vmem:[#allocation4 + $0x248] sm:$0xff] }
 0xc61   :  { %v823_v12 = vmul.f32 %v1696_v10, %v818_v54  ;;  %1029 = vmatpush.msrb.mxu0 %v1023_v31  ;;  %v1020_v54 = vld [vmem:[#allocation4 + $0x240] sm:$0xff] }
 0xc62   :  { %1000 = vmatpush.msra.mxu3 %v973_v47  ;;  %1307 = vmatpush.msra.mxu2 %v1023_v31 }
 0xc63   :  { %1030 = vmatpush.msrb.mxu0 %v1022_v7 }
 0xc64   :  { %1308 = vmatpush.msra.mxu2 %v1022_v7 }
 0xc65   :  { %1294 = vmatmul.msk.f32.gmra.mxu2 %vm85_vm1, %v821_v58  ;;  %1031 = vmatpush.msrb.mxu0 %v1021_v8 }
 0xc66   :  { %1309 = vmatpush.msra.mxu2 %v1021_v8  ;;  %v1130_v8 = vld [vmem:[#allocation4 + $0x278] sm:$0xff] }
 0xc67   :  { %1032 = vmatpush.msrb.mxu0 %v1020_v54 }
 0xc68   :  { %1310 = vmatpush.msra.mxu2 %v1020_v54 }
 0xc6d   :  { %1295 = vmatmul.msk.f32.gmra.mxu2 %vm85_vm1, %v822_v3 }
 0xc75   :  { %1296 = vmatmul.msk.f32.gmra.mxu2 %vm85_vm1, %v823_v12  ;;  %v1019_v12 = vld [vmem:[#allocation4 + $0x238] sm:$0xff] }
 0xc76   :  { %1033 = vmatpush.msrb.mxu0 %v1019_v12  ;;  %1311 = vmatpush.msra.mxu2 %v1019_v12 }
 0xc78   :  { %1034 = vmatpush.msrb.mxu0 %v1018_v13  ;;  %1312 = vmatpush.msra.mxu2 %v1018_v13 }
 0xc7a   :  { %1035 = vmatpush.msrb.mxu0 %v1017_v15  ;;  %1313 = vmatpush.msra.mxu2 %v1017_v15 }
 0xce0   :  { %v865_v16 = vpop.f32.mrf.mxu2 }
 0xce8   :  { %v868_v9 = vpop.f32.mrf.mxu2 }
 0xcf0   :  { %v871_v17 = vpop.f32.mrf.mxu2 }
 0xcf1   :  { %879 = vrot.lane.b32.xlu2 %v871_v17, %s1473_s22 }
 0xcf8   :  { %v874_v19 = vpop.f32.mrf.mxu2 }
 0xcf9   :  { %881 = vrot.lane.b32.xlu0 %v874_v19, %s1473_s22  ;;  %v1015_v19 = vld [vmem:[#allocation4 + $0x218] sm:$0xff] }
 0xd4b   :  { %v880_v21 = vpop.permute.xlu2 %879 }
 0xd4c   :  { %v885_v10 = vsel %vm201_vm9, %v865_v16, %v880_v21  ;;  %v1014_v21 = vld [vmem:[#allocation4 + $0x210] sm:$0xff] }
 0xd4d   :  { %1297 = vmatmul.msk.f32.vlgmr.msrb.gmra.mxu1 %vm85_vm1, %v885_v10 }
 0xd6b   :  { %v882_v23 = vpop.permute.xlu0 %881 }
 0xd6c   :  { %v886_v25 = vsel %vm201_vm9, %v868_v9, %v882_v23  ;;  %v1016_v9 = vld [vmem:[#allocation4 + $0x220] sm:$0xff]  ;;  %v1013_v23 = vld [vmem:[#allocation4 + $0x208] sm:$0xff] }
 0xd6d   :  { %1298 = vmatmul.msk.f32.gmra.mxu1 %vm85_vm1, %v886_v25  ;;  %1036 = vmatpush.msrb.mxu0 %v1016_v9 }
 0xd6e   :  { %1314 = vmatpush.msra.mxu2 %v1016_v9 }
 0xd6f   :  { %1037 = vmatpush.msrb.mxu0 %v1015_v19 }
 0xd70   :  { %1315 = vmatpush.msra.mxu2 %v1015_v19 }
 0xd71   :  { %1038 = vmatpush.msrb.mxu0 %v1014_v21 }
 0xd72   :  { %1316 = vmatpush.msra.mxu2 %v1014_v21 }
 0xd73   :  { %1039 = vmatpush.msrb.mxu0 %v1013_v23 }
 0xd74   :  { %1317 = vmatpush.msra.mxu2 %v1013_v23 }
 0xdca   :  { %v915_v29 = vpop.f32.mrf.mxu1 }
 0xdcb   :  { %v916_v32 = vadd.f32 %v915_v29, %v891_v28 }
 0xdcd   :  { %v921_v0 = vadd.f32 %v916_v32, %v1638_v34 }
 0xdcf   :  { %v923_v14 = vsel %vm85_vm1, %v921_v0, 0.0 }
 0xdd0   :  { %924 = vadd.xlane.f32.xlu0 %v923_v14  ;;  %v1012_v14 = vld [vmem:[#allocation4 + $0x200] sm:$0xff] }
 0xdd1   :  { %1040 = vmatpush.msrb.mxu0 %v1012_v14  ;;  %1318 = vmatpush.msra.mxu2 %v1012_v14 }
 0xdea   :  { %v918_v6 = vpop.f32.mrf.mxu1 }
 0xdeb   :  { %v919_v62 = vadd.f32 %v918_v6, %v891_v28  ;;  %v1011_v6 = vld [vmem:[#allocation4 + $0x1f8] sm:$0xff] }
 0xdec   :  { %1041 = vmatpush.msrb.mxu0 %v1011_v6  ;;  %1319 = vmatpush.msra.mxu2 %v1011_v6 }
 0xded   :  { %v922_v33 = vadd.f32 %v919_v62, %v1647_v36  ;;  %v1010_v62 = vld [vmem:[#allocation4 + $0x1f0] sm:$0xff] }
 0xdee   :  { %1042 = vmatpush.msrb.mxu0 %v1010_v62  ;;  %1320 = vmatpush.msra.mxu2 %v1010_v62  ;;  %v1104_v62 = vld [vmem:[#allocation4 + $0x78] sm:$0xff] }
 0xdef   :  { %v926_v37 = vsel %vm85_vm1, %v922_v33, 0.0 }
 0xdf0   :  { %927 = vadd.xlane.f32.xlu1 %v926_v37 }
 0xe43   :  { %v925_v61 = vpop.xlane.xlu0 %924 }
 0xe44   :  { %v929_v38 = vmul.f32 %v925_v61, %v1500_v24 }
 0xe46   :  { %v931_v4 = vsub.f32 %v921_v0, %v929_v38 }
 0xe48   :  { %v933_v5 = vmul.f32 %v931_v4, %v931_v4 }
 0xe4a   :  { %v935_v39 = vsel %vm85_vm1, %v933_v5, 0.0 }
 0xe4b   :  { %936 = vadd.xlane.f32.xlu2 %v935_v39 }
 0xe63   :  { %v928_v40 = vpop.xlane.xlu1 %927 }
 0xe64   :  { %v930_v34 = vmul.f32 %v928_v40, %v1500_v24  ;;  %v1026_v40 = vperm.slane %v1717_v26, 3 }
 0xe66   :  { %v1727_v41 = vsub.f32 %v922_v33, %v930_v34  ;;  %v1353_v33 = vld [vmem:[#allocation4 + $0x1e8] ss:$0 sm:$0xff] }
 0xe68   :  { %v934_v42 = vmul.f32 %v1727_v41, %v1727_v41 }
 0xe6a   :  { %v938_v36 = vsel %vm85_vm1, %v934_v42, 0.0 }
 0xe6b   :  { %939 = vadd.xlane.f32.xlu0 %v938_v36 }
 0xebe   :  { %v937_v48 = vpop.xlane.xlu2 %936 }
 0xebf   :  { %v941_v49 = vmul.f32 %v937_v48, %v1500_v24 }
 0xec1   :  { %v943_v50 = vadd.f32 1e-05, %v941_v49 }
 0xec3   :  { %1401 = vrsqrt.f32 %v943_v50  ;;  %vm951_vm13 = vweird.f32 %v943_v50 }
 0xec9   :  { %v1402_v52 = vpop.eup %1401 }
 0xeca   :  { %v946_v53 = vmul.f32 %v1402_v52, %v943_v50  ;;  %vm952_vm12 = vweird.f32 %v1402_v52 }
 0xecb   :  { %vm953_vm14 = vmor %vm951_vm13, %vm952_vm12 }
 0xecc   :  { %v947_v46 = vmul.f32 %v1402_v52, %v946_v53 }
 0xece   :  { %v948_v55 = vmul.f32 0.5, %v947_v46 }
 0xed0   :  { %v949_v18 = vsub.f32 1.5, %v948_v55 }
 0xed2   :  { %v950_v56 = vmul.f32 %v1402_v52, %v949_v18 }
 0xed4   :  { %v954_v22 = vsel %vm953_vm14, %v1402_v52, %v950_v56 }
 0xed5   :  { %v965_v58 = vmul.f32 %v954_v22, %v931_v4 }
 0xed7   :  { %v968_v60 = vmul.f32 %v967_v57, %v965_v58 }
 0xed9   :  { %v1735_v63 = vadd.f32 %v970_v59, %v968_v60 }
 0xedb   :  { %1299 = vmatmul.msk.f32.vlgmr.msra.gmra.mxu3 %vm85_vm1, %v1735_v63 }
 0xede   :  { %v940_v51 = vpop.xlane.xlu0 %939 }
 0xedf   :  { %v942_v3 = vmul.f32 %v940_v51, %v1500_v24  ;;  %v1132_v51 = vld [vmem:[#allocation4 + $0x288] sm:$0xff] }
 0xee0   :  { %1149 = vmatpush.msrb.mxu3 %v1132_v51 }
 0xee1   :  { %v944_v2 = vadd.f32 1e-05, %v942_v3  ;;  %v1131_v3 = vld [vmem:[#allocation4 + $0x280] sm:$0xff] }
 0xee2   :  { %1150 = vmatpush.msrb.mxu3 %v1131_v3 }
 0xee3   :  { %1403 = vrsqrt.f32 %v944_v2  ;;  %vm961_vm0 = vweird.f32 %v944_v2 }
 0xee4   :  { %1151 = vmatpush.msrb.mxu3 %v1130_v8 }
 0xee9   :  { %v1404_v11 = vpop.eup %1403 }
 0xeea   :  { %v956_v16 = vmul.f32 %v1404_v11, %v944_v2  ;;  %vm962_vm15 = vweird.f32 %v1404_v11 }
 0xeeb   :  { %vm963_vm2 = vmor %vm961_vm0, %vm962_vm15 }
 0xeec   :  { %v957_v17 = vmul.f32 %v1404_v11, %v956_v16 }
 0xeee   :  { %v958_v20 = vmul.f32 0.5, %v957_v17 }
 0xef0   :  { %v959_v10 = vsub.f32 1.5, %v958_v20  ;;  %v1096_v20 = vperm.slane %v1717_v26, 4 }
 0xef2   :  { %v960_v25 = vmul.f32 %v1404_v11, %v959_v10 }
 0xef4   :  { %v964_v28 = vsel %vm963_vm2, %v1404_v11, %v960_v25  ;;  %v1099_v25 = vperm.slane %v1717_v26, 5 }
 0xef5   :  { %v966_v29 = vmul.f32 %v964_v28, %v1727_v41 }
 0xef7   :  { %v969_v32 = vmul.f32 %v967_v57, %v966_v29 }
 0xef9   :  { %v972_v0 = vadd.f32 %v970_v59, %v969_v32 }
 0xefb   :  { %1300 = vmatmul.msk.f32.gmra.mxu3 %vm85_vm1, %v972_v0 }
 0xf5e   :  { %v1002_v37 = vpop.f32.mrf.mxu3 }
 0xf5f   :  { %v1003_v61 = vadd.f32 %v1353_v33, %v1002_v37 }
 0xf61   :  { %v1008_v38 = vmax.f32 %v1003_v61, 0.0  ;;  %v1128_v61 = vld [vmem:[#allocation4 + $0x290] sm:$0x7] }
 0xf62   :  { %v1133_v26 = vperm.slane %v1128_v61, 0 }
 0xf63   :  { %1043 = vmatmul.f32.vlgmr.msrb.gmra.mxu0 %v1008_v38 }
 0xf7e   :  { %v1005_v4 = vpop.f32.mrf.mxu3 }
 0xf7f   :  { %v1006_v5 = vadd.f32 %v1353_v33, %v1005_v4  ;;  %v1129_v33 = vld [vmem:[#allocation4 + $0x270] sm:$0xff] }
 0xf80   :  { %1152 = vmatpush.msrb.mxu3 %v1129_v33 }
 0xf81   :  { %v1009_v39 = vmax.f32 %v1006_v5, 0.0 }
 0xf83   :  { %1046 = vmatmul.f32.vlgmr.msra.gmra.mxu2 %v1009_v39 }
 0xfe0   :  { %v1044_v34 = vpop.f32.mrf.mxu0 }
 0xfe1   :  { %v1045_v41 = vadd.f32 %v1044_v34, %v1026_v40 }
 0xfe3   :  { %v1050_v42 = vadd.f32 %v1045_v41, %v1735_v63 }
 0xfe5   :  { %v1052_v36 = vsel %vm85_vm1, %v1050_v42, 0.0 }
 0xfe6   :  { %1053 = vadd.xlane.f32.xlu0 %v1052_v36  ;;  %v1230_v36 = vld [vmem:[#allocation4 + $0x2b0] sm:$0xff] }
0x1006   :  { %v1047_v43 = vpop.f32.mrf.mxu2 }
0x1007   :  { %v1048_v44 = vadd.f32 %v1047_v43, %v1026_v40  ;;  %v1229_v43 = vld [vmem:[#allocation4 + $0x2a8] sm:$0xff] }
0x1009   :  { %v1051_v45 = vadd.f32 %v1048_v44, %v972_v0 }
0x100b   :  { %v1055_v47 = vsel %vm85_vm1, %v1051_v45, 0.0 }
0x100c   :  { %1056 = vadd.xlane.f32.xlu1 %v1055_v47  ;;  %v1227_v47 = vld [vmem:[#allocation4 + $0x298] sm:$0xff] }
0x1059   :  { %v1054_v48 = vpop.xlane.xlu0 %1053 }
0x105a   :  { %v1058_v49 = vmul.f32 %v1054_v48, %v1500_v24 }
0x105c   :  { %v1060_v50 = vsub.f32 %v1050_v42, %v1058_v49 }
0x105e   :  { %v1062_v52 = vmul.f32 %v1060_v50, %v1060_v50 }
0x1060   :  { %v1064_v53 = vsel %vm85_vm1, %v1062_v52, 0.0 }
0x1061   :  { %1065 = vadd.xlane.f32.xlu2 %v1064_v53 }
0x107f   :  { %v1057_v46 = vpop.xlane.xlu1 %1056 }
0x1080   :  { %v1059_v55 = vmul.f32 %v1057_v46, %v1500_v24 }
0x1082   :  { %v1061_v18 = vsub.f32 %v1051_v45, %v1059_v55  ;;  %v1228_v45 = vld [vmem:[#allocation4 + $0x2a0] sm:$0xff]  ;;  %v1179_v55 = vperm.slane %v1128_v61, 1 }
0x1084   :  { %v1063_v56 = vmul.f32 %v1061_v18, %v1061_v18 }
0x1086   :  { %v1067_v57 = vsel %vm85_vm1, %v1063_v56, 0.0 }
0x1087   :  { %1068 = vadd.xlane.f32.xlu1 %v1067_v57 }
0x10d4   :  { %v1066_v22 = vpop.xlane.xlu2 %1065 }
0x10d5   :  { %v1070_v58 = vmul.f32 %v1066_v22, %v1500_v24 }
0x10d7   :  { %v1072_v59 = vadd.f32 1e-05, %v1070_v58 }
0x10d9   :  { %1405 = vrsqrt.f32 %v1072_v59  ;;  %vm1080_vm4 = vweird.f32 %v1072_v59 }
0x10df   :  { %v1406_v60 = vpop.eup %1405 }
0x10e0   :  { %v1075_v63 = vmul.f32 %v1406_v60, %v1072_v59  ;;  %vm1081_vm3 = vweird.f32 %v1406_v60 }
0x10e1   :  { %vm1082_vm5 = vmor %vm1080_vm4, %vm1081_vm3 }
0x10e2   :  { %v1076_v27 = vmul.f32 %v1406_v60, %v1075_v63 }
0x10e4   :  { %v1077_v2 = vmul.f32 0.5, %v1076_v27 }
0x10e6   :  { %v1078_v54 = vsub.f32 1.5, %v1077_v2 }
0x10e8   :  { %v1079_v13 = vmul.f32 %v1406_v60, %v1078_v54 }
0x10ea   :  { %v1083_v16 = vsel %vm1082_vm5, %v1406_v60, %v1079_v13 }
0x10eb   :  { %v1094_v19 = vmul.f32 %v1083_v16, %v1060_v50 }
0x10ed   :  { %v1097_v28 = vmul.f32 %v1096_v20, %v1094_v19 }
0x10ef   :  { %v1100_v0 = vadd.f32 %v1099_v25, %v1097_v28 }
0x10f1   :  { %v1102_v6 = vadd.f32 %v1100_v0, %v1634_v30 }
0x10fa   :  { %v1069_v1 = vpop.xlane.xlu1 %1068 }
0x10fb   :  { %v1071_v31 = vmul.f32 %v1069_v1, %v1500_v24 }
0x10fd   :  { %v1073_v7 = vadd.f32 1e-05, %v1071_v31 }
0x10ff   :  { %1407 = vrsqrt.f32 %v1073_v7  ;;  %vm1090_vm7 = vweird.f32 %v1073_v7 }
0x1105   :  { %v1408_v12 = vpop.eup %1407 }
0x1106   :  { %v1085_v11 = vmul.f32 %v1408_v12, %v1073_v7  ;;  %vm1091_vm6 = vweird.f32 %v1408_v12 }
0x1107   :  { %vm1092_vm8 = vmor %vm1090_vm7, %vm1091_vm6 }
0x1108   :  { %v1086_v15 = vmul.f32 %v1408_v12, %v1085_v11 }
0x110a   :  { %v1087_v9 = vmul.f32 0.5, %v1086_v15 }
0x110c   :  { %v1088_v17 = vsub.f32 1.5, %v1087_v9 }
0x110e   :  { %v1089_v21 = vmul.f32 %v1408_v12, %v1088_v17 }
0x1110   :  { %v1093_v10 = vsel %vm1092_vm8, %v1408_v12, %v1089_v21 }
0x1111   :  { %v1095_v23 = vmul.f32 %v1093_v10, %v1061_v18  ;;  %v1181_v18 = vperm.slane %v1128_v61, 2 }
0x1113   :  { %v1098_v29 = vmul.f32 %v1096_v20, %v1095_v23 }
0x1115   :  { %v1101_v32 = vadd.f32 %v1099_v25, %v1098_v29 }
0x1117   :  { %v1103_v14 = vadd.f32 %v1101_v32, %v1643_v35 }
0x1119   :  { %1122 = vmatpush.msra.mxu1 %v1103_v14 }
0x111b   :  { %1123 = vmatpush.msra.mxu1 %v1102_v6 }
0x111c   :  { %1301 = vmatmul.msk.f32.vlgmr.msra.gmra.mxu1 %vm201_vm9, %v1104_v62 }
0x111d   :  { %1248 = vmatpush.msrb.mxu1 %v1230_v36 }
0x111f   :  { %1249 = vmatpush.msrb.mxu1 %v1229_v43 }
0x1121   :  { %1250 = vmatpush.msrb.mxu1 %v1228_v45 }
0x1123   :  { %1251 = vmatpush.msrb.mxu1 %v1227_v47 }
0x1199   :  { %v1125_v37 = vpop.f32.mrf.mxu1 }
0x119a   :  { %1302 = vmatmul.msk.f32.vlgmr.msrb.gmra.mxu3 %vm85_vm1, %v1125_v37 }
0x121d   :  { %v1154_v38 = vpop.f32.mrf.mxu3 }
0x121e   :  { %v1155_v4 = vadd.f32 %v1154_v38, %v1133_v26 }
0x1220   :  { %v1157_v5 = vsel %vm85_vm1, %v1155_v4, 0.0 }
0x1221   :  { %1158 = vadd.xlane.f32.xlu0 %v1157_v5  ;;  %v1354_v5 = vld [vmem:[#allocation4 + $0x2b8] ss:$0 sm:$0xff] }
0x1294   :  { %v1159_v35 = vpop.xlane.xlu0 %1158 }
0x1295   :  { %v1160_v39 = vmul.f32 %v1159_v35, %v1500_v24 }
0x1297   :  { %v1161_v30 = vsub.f32 %v1155_v4, %v1160_v39 }
0x1299   :  { %v1162_v40 = vmul.f32 %v1161_v30, %v1161_v30 }
0x129b   :  { %v1163_v34 = vsel %vm85_vm1, %v1162_v40, 0.0 }
0x129c   :  { %1164 = vadd.xlane.f32.xlu1 %v1163_v34 }
0x130f   :  { %v1165_v41 = vpop.xlane.xlu1 %1164 }
0x1310   :  { %v1166_v42 = vmul.f32 %v1165_v41, %v1500_v24 }
0x1312   :  { %v1167_v44 = vadd.f32 1e-05, %v1166_v42 }
0x1314   :  { %1409 = vrsqrt.f32 %v1167_v44  ;;  %vm1174_vm10 = vweird.f32 %v1167_v44 }
0x131a   :  { %v1410_v48 = vpop.eup %1409 }
0x131b   :  { %v1169_v49 = vmul.f32 %v1410_v48, %v1167_v44  ;;  %vm1175_vm9 = vweird.f32 %v1410_v48 }
0x131c   :  { %vm1176_vm11 = vmor %vm1174_vm10, %vm1175_vm9 }
0x131d   :  { %v1170_v50 = vmul.f32 %v1410_v48, %v1169_v49 }
0x131f   :  { %v1171_v52 = vmul.f32 0.5, %v1170_v50 }
0x1321   :  { %v1172_v53 = vsub.f32 1.5, %v1171_v52 }
0x1323   :  { %v1173_v46 = vmul.f32 %v1410_v48, %v1172_v53 }
0x1325   :  { %v1177_v24 = vsel %vm1176_vm11, %v1410_v48, %v1173_v46 }
0x1326   :  { %v1178_v56 = vmul.f32 %v1177_v24, %v1161_v30 }
0x1328   :  { %v1180_v57 = vmul.f32 %v1179_v55, %v1178_v56 }
0x132a   :  { %v1182_v22 = vadd.f32 %v1181_v18, %v1180_v57 }
0x132c   :  { %v1184_v58 = vmul.f32 0.70710677, %v1182_v22  ;;  %v1183_v26 = vmul.f32 0.5, %v1182_v22 }
0x132e   :  { %v1185_v59 = vmul.f32 %v1184_v58, %v1184_v58 }
0x1330   :  { %v1186_v60 = vmin.f32 %v1185_v59, 16.0 }
0x1332   :  { %v1187_v63 = vmul.f32 2.1237322e-06, %v1186_v60  ;;  %v1198_v27 = vmul.f32 3.8918573e-05, %v1186_v60 }
0x1334   :  { %v1188_v1 = vadd.f32 0.00028619796, %v1187_v63  ;;  %v1199_v31 = vadd.f32 0.001143296, %v1198_v27 }
0x1336   :  { %v1189_v51 = vmul.f32 %v1188_v1, %v1186_v60  ;;  %v1200_v3 = vmul.f32 %v1199_v31, %v1186_v60 }
0x1338   :  { %v1201_v7 = vadd.f32 0.014752088, %v1200_v3  ;;  %v1190_v2 = vadd.f32 0.0036580483, %v1189_v51 }
0x133a   :  { %v1202_v8 = vmul.f32 %v1201_v7, %v1186_v60  ;;  %v1191_v12 = vmul.f32 %v1190_v2, %v1186_v60 }
0x133c   :  { %v1203_v54 = vadd.f32 0.112945676, %v1202_v8  ;;  %v1192_v15 = vadd.f32 0.05243302, %v1191_v12 }
0x133e   :  { %v1204_v13 = vmul.f32 %v1203_v54, %v1186_v60  ;;  %v1193_v17 = vmul.f32 %v1192_v15, %v1186_v60 }
0x1340   :  { %v1205_v11 = vadd.f32 0.4994258, %v1204_v13  ;;  %v1194_v19 = vadd.f32 0.18741608, %v1193_v17 }
0x1342   :  { %v1206_v16 = vmul.f32 %v1205_v11, %v1186_v60  ;;  %v1195_v21 = vmul.f32 %v1194_v19, %v1186_v60 }
0x1344   :  { %v1207_v9 = vadd.f32 1.0, %v1206_v16  ;;  %v1196_v28 = vadd.f32 1.1283791, %v1195_v21 }
0x1346   :  { %1411 = vrcp.f32 %v1207_v9  ;;  %v1219_v25 = vand.u32 2147483648, %v1207_v9  ;;  %v1217_v32 = vand.u32 2147483647, %v1207_v9  ;;  %vm1213_vm13 = vweird.f32 %v1207_v9 }
0x1347   :  { %v1197_v6 = vmul.f32 %v1196_v28, %v1184_v58 }
0x1348   :  { %v1220_v14 = vor.u32 1.1754944e-38, %v1219_v25  ;;  %vm1218_vm15 = vcmp.eq.f32.partialorder %v1217_v32, 8.507059e+37 }
0x134c   :  { %v1412_v20 = vpop.eup %1411 }
0x134d   :  { %v1209_v10 = vmul.f32 %v1412_v20, %v1207_v9  ;;  %vm1214_vm12 = vweird.f32 %v1412_v20 }
0x134e   :  { %vm1215_vm14 = vmor %vm1213_vm13, %vm1214_vm12 }
0x134f   :  { %v1210_v23 = vsub.f32 1.0, %v1209_v10 }
0x1351   :  { %v1211_v29 = vmul.f32 %v1412_v20, %v1210_v23 }
0x1353   :  { %v1212_v0 = vadd.f32 %v1412_v20, %v1211_v29 }
0x1355   :  { %v1216_v62 = vsel %vm1215_vm14, %v1412_v20, %v1212_v0 }
0x1356   :  { %v1221_v33 = vsel %vm1218_vm15, %v1220_v14, %v1216_v62 }
0x1357   :  { %v1222_v37 = vmul.f32 %v1221_v33, %v1197_v6 }
0x1359   :  { %v1303_v61 = vclamps-f32 %v1222_v37, 1.0 }
0x135b   :  { %v1225_v38 = vadd.f32 1.0, %v1303_v61 }
0x135d   :  { %v1226_v4 = vmul.f32 %v1225_v38, %v1183_v26 }
0x135f   :  { %1304 = vmatmul.msk.f32.vlgmr.msrb.gmra.mxu1 %vm85_vm1, %v1226_v4 }
0x13dc   :  { %v1253_v35 = vpop.f32.mrf.mxu1 }
0x13dd   :  { %v1254_v39 = vadd.f32 %v1354_v5, %v1253_v35 }
0x13df   :  { %1256 = vst [vmem:[%s1768_s2] sm:$0xff] %v1254_v39 }
0x13e0   :  { %1261 = vsyncpa [#allocation3], 1 }
0x13e1   :  { %1262 = vsyncpa [#allocation5], 1 }

</bundles_post_ra>
